<compile_context>
chip_gen: v5e
topology: v5e:2x2
jax: 0.10.0
libtpu: 0.0.40
codegen_flags: <defaults>
</compile_context>

<pallas_src>
import jax
import jax.numpy as jnp
from jax import lax
from jax.experimental import pallas as pl
from jax.experimental.pallas import tpu as pltpu

# ---- model hyper-parameters (mirroring the PyTorch module) ----
EMB_DIM_W = 50
WIN_SIZE = 5
HIDDEN_DIM = 128
MAX_NORM = 2.0
VOCAB_W = 100          # len(vocabW)  -- synthetic
VOCAB_L = 16           # len(vocabL)  -- synthetic
FEAT = EMB_DIM_W * WIN_SIZE            # 250 (logical)

# ---- TPU layout constants ----
VOCAB_PAD = 128        # one-hot lane width (>= VOCAB_W, multiple of 128)
OUT_PAD = 128          # lane-dense logits (unmasked vst)

# NOTE: the folded table (5 x 128 x 128 bf16 ~ 160 KB) trivially fits VMEM.
# For a production vocab (e.g. 100k words) the one-hot trick is no longer the
# right gather; switch to an HBM (pl.ANY) table + scalar-prefetch DMA-gather of
# only the B*WIN needed rows (v7x has only 64 MiB VMEM).


def fused_tagger_kernel(ids_ref,   # VMEM (TB, WIN_SIZE)           int32
                        m_ref,     # VMEM (WIN, VOCAB_PAD, HIDDEN) bf16  (emb@W1 folded)
                        b1_ref,    # VMEM (1, HIDDEN)              f32
                        w2_ref,    # VMEM (HIDDEN, OUT_PAD)        bf16
                        b2_ref,    # VMEM (1, OUT_PAD)             f32 (-1e30 pad)
                        o_ref):    # VMEM (TB, OUT_PAD)            f32
    tb = ids_ref.shape[0]
    vpad = m_ref.shape[1]
    hidden = m_ref.shape[2]

    # Dropout1 / Dropout2 are identity in eval mode.
    # TODO(synk): training-mode dropout (pltpu.prng_*) not implemented.

    ids = ids_ref[...]                                         # (TB, WIN) int32
    lane = lax.broadcasted_iota(jnp.int32, (tb, vpad), 1)      # lane index

    # ---- embedding gather fused with fc1 as one-hot MXU matmuls ----
    # h_pre[b] = sum_w M[w][ids[b,w]]  (== renorm(emb)[ids] @ W1, exactly)
    acc = jnp.zeros((tb, hidden), jnp.float32)
    for w in range(WIN_SIZE):                                   # tiny static unroll (5)
        onehot = (lane == ids[:, w:w + 1]).astype(jnp.bfloat16)  # (TB, VOCAB_PAD)
        acc = acc + jnp.dot(onehot, m_ref[w],
                            preferred_element_type=jnp.float32)

    # ---- fc1 bias + tanh (f32 elementwise -> v5e-safe) ----
    h = jnp.tanh(acc + b1_ref[...])                             # (TB, HIDDEN) f32

    # ---- fc2 : padded logit columns get -1e30 from the bias -> ignored by softmax ----
    logits = (jnp.dot(h.astype(jnp.bfloat16), w2_ref[...],
                      preferred_element_type=jnp.float32) + b2_ref[...])

    # ---- numerically-stable log_softmax over the lane axis ----
    mx = jnp.max(logits, axis=-1, keepdims=True)
    s = logits - mx
    lse = jnp.log(jnp.sum(jnp.exp(s), axis=-1, keepdims=True))
    o_ref[...] = s - lse


def prepare_params(emb_table, w1, b1, w2, b2):
    """One-time (outside the kernel) re-layout / folding of parameters."""
    # Pre-renormalize the embedding table (max_norm=2, eps matches PyTorch's
    # embedding_renorm_).  Forward output is identical to per-lookup renorm.
    norms = jnp.sqrt(jnp.sum(emb_table * emb_table, axis=-1, keepdims=True))
    scale = jnp.where(norms > MAX_NORM, MAX_NORM / (norms + 1e-7), 1.0)
    emb_rn = emb_table * scale                                  # (V, 50) f32

    # Fold embedding into fc1 per window: M[w] = emb_rn @ W1[w*50:(w+1)*50, :]
    m_fold = jnp.zeros((WIN_SIZE, VOCAB_PAD, HIDDEN_DIM), jnp.float32)
    for w in range(WIN_SIZE):
        mw = emb_rn @ w1[w * EMB_DIM_W:(w + 1) * EMB_DIM_W, :]  # (V, 128) f32
        m_fold = m_fold.at[w, :VOCAB_W, :].set(mw)
    m_fold = m_fold.astype(jnp.bfloat16)

    b1_p = b1.reshape(1, HIDDEN_DIM).astype(jnp.float32)
    w2_p = (jnp.zeros((HIDDEN_DIM, OUT_PAD), jnp.float32)
            .at[:, :VOCAB_L].set(w2).astype(jnp.bfloat16))
    # Padded logit columns biased to -1e30 so they never affect max / sum-exp.
    b2_p = (jnp.full((1, OUT_PAD), -1e30, jnp.float32)
            .at[0, :VOCAB_L].set(b2.reshape(-1)))
    return m_fold, b1_p, w2_p, b2_p


def _round_up(x, m):
    return ((x + m - 1) // m) * m


def _choose_tb(batch):
    """Batch-tile size: big enough to feed the MXU / amortize grid overhead,
    but keep >= 2 grid steps for large batches so both v7x TCs get work."""
    b8 = _round_up(batch, 8)
    if b8 <= 128:
        return b8            # single step, whole batch
    if b8 >= 512:
        return 256           # fills v6e/v7x 256-wide MXU M dim, >= 2 steps
    return 128               # 2-3 steps for mid-size batches


@jax.jit
def my_model_forward(token_ids, m_fold, b1_p, w2_p, b2_p):
    """token_ids: (B, WIN_SIZE) int32 -> (B, VOCAB_L) f32 log-probabilities."""
    B = token_ids.shape[0]
    tb = _choose_tb(B)
    b_pad = _round_up(B, tb)
    if b_pad != B:                                  # pad batch (token 0 rows, harmless)
        token_ids = jnp.pad(token_ids, ((0, b_pad - B), (0, 0)))
    token_ids = token_ids.astype(jnp.int32)
    grid = (b_pad // tb,)

    bytes_accessed = (b_pad * WIN_SIZE * 4
                      + WIN_SIZE * VOCAB_PAD * HIDDEN_DIM * 2 + HIDDEN_DIM * 4
                      + HIDDEN_DIM * OUT_PAD * 2 + OUT_PAD * 4
                      + b_pad * OUT_PAD * 4)

    out = pl.pallas_call(
        fused_tagger_kernel,
        out_shape=jax.ShapeDtypeStruct((b_pad, OUT_PAD), jnp.float32),
        grid_spec=pltpu.PrefetchScalarGridSpec(
            num_scalar_prefetch=0,
            grid=grid,
            in_specs=[
                pl.BlockSpec((tb, WIN_SIZE), lambda i: (i, 0)),
                pl.BlockSpec((WIN_SIZE, VOCAB_PAD, HIDDEN_DIM), lambda i: (0, 0, 0)),
                pl.BlockSpec((1, HIDDEN_DIM), lambda i: (0, 0)),
                pl.BlockSpec((HIDDEN_DIM, OUT_PAD), lambda i: (0, 0)),
                pl.BlockSpec((1, OUT_PAD), lambda i: (0, 0)),
            ],
            out_specs=pl.BlockSpec((tb, OUT_PAD), lambda i: (i, 0)),
        ),
        compiler_params=pltpu.CompilerParams(
            dimension_semantics=("parallel",)),     # batch axis shards over v7x's 2 TCs
        cost_estimate=pl.CostEstimate(
            flops=2 * b_pad * (WIN_SIZE * VOCAB_PAD * HIDDEN_DIM
                               + HIDDEN_DIM * OUT_PAD),
            transcendentals=b_pad * (HIDDEN_DIM + OUT_PAD),
            bytes_accessed=bytes_accessed),
    )(token_ids, m_fold, b1_p, w2_p, b2_p)

    return out[:B, :VOCAB_L]


def reference_forward(token_ids, emb_table, w1, b1, w2, b2):
    """Pure-JAX f32 reference (PyTorch forward semantics, eval mode)."""
    B = token_ids.shape[0]
    rows = jnp.take(emb_table, token_ids, axis=0)                   # (B, WIN, EMB)
    norms = jnp.sqrt(jnp.sum(rows * rows, axis=-1, keepdims=True))
    scale = jnp.where(norms > MAX_NORM, MAX_NORM / (norms + 1e-7), 1.0)
    x = (rows * scale).reshape(B, WIN_SIZE * EMB_DIM_W)
    h = jnp.tanh(x @ w1 + b1.reshape(1, -1))
    logits = h @ w2 + b2.reshape(1, -1)
    return jax.nn.log_softmax(logits, axis=-1)


if __name__ == "__main__":
    key = jax.random.PRNGKey(0)
    k_emb, k_w1, k_b1, k_w2, k_b2, k_idx = jax.random.split(key, 6)

    # Deterministic synthetic parameters (module __init__ defines the shapes).
    emb_table = jax.random.uniform(k_emb, (VOCAB_W, EMB_DIM_W), jnp.float32)
    w1 = jax.random.normal(k_w1, (FEAT, HIDDEN_DIM), jnp.float32) * (1.0 / FEAT ** 0.5)
    b1 = jax.random.normal(k_b1, (HIDDEN_DIM,), jnp.float32) * 0.01
    w2 = jax.random.normal(k_w2, (HIDDEN_DIM, VOCAB_L), jnp.float32) * (1.0 / HIDDEN_DIM ** 0.5)
    b2 = jax.random.normal(k_b2, (VOCAB_L,), jnp.float32) * 0.01

    # Input: batch of window token-id contexts, (B, winSize).
    # B=256 -> TB=128, 2 grid steps (both v7x TensorCores get work).
    B = 256
    token_ids = jax.random.randint(k_idx, (B, WIN_SIZE), 0, VOCAB_W, dtype=jnp.int32)

    params = prepare_params(emb_table, w1, b1, w2, b2)   # one-time fold, outside kernel
    out = my_model_forward(token_ids, *params)
    out = jax.block_until_ready(out)

    ref = reference_forward(token_ids, emb_table, w1, b1, w2, b2)
    assert out.shape == (B, VOCAB_L)
    # bf16 MXU operands (f32 accumulation) vs pure-f32 reference -> relaxed tolerance.
    max_err = float(jnp.max(jnp.abs(out - ref)))
    assert jnp.allclose(out, ref, atol=3e-2, rtol=3e-2), f"max abs err = {max_err}"

    print("KERNEL_OK")
</pallas_src>

<mosaic_0001>
module attributes {stable_mosaic.version = 11 : i64} {
  func.func @fused_tagger_kernel(%arg0: i32, %arg1: memref<128x5xi32, #tpu.memory_space<vmem>>, %arg2: memref<5x128x128xbf16, #tpu.memory_space<vmem>>, %arg3: memref<1x128xf32, #tpu.memory_space<vmem>>, %arg4: memref<128x128xbf16, #tpu.memory_space<vmem>>, %arg5: memref<1x128xf32, #tpu.memory_space<vmem>>, %arg6: memref<128x128xf32, #tpu.memory_space<vmem>>) attributes {dimension_semantics = [#tpu.dimension_semantics<parallel>], iteration_bounds = array<i64: 2>, scalar_prefetch = 0 : i64, scratch_operands = 0 : i64, tpu.core_type = #tpu.core_type<tc>, window_params = [{transform_indices = @transform_0, window_bounds = array<i64: 128, 5>}, {pipeline_mode = #tpu.pipeline_mode<synchronous>, transform_indices = @transform_1, window_bounds = array<i64: 5, 128, 128>}, {pipeline_mode = #tpu.pipeline_mode<synchronous>, transform_indices = @transform_2, window_bounds = array<i64: 1, 128>}, {pipeline_mode = #tpu.pipeline_mode<synchronous>, transform_indices = @transform_3, window_bounds = array<i64: 128, 128>}, {pipeline_mode = #tpu.pipeline_mode<synchronous>, transform_indices = @transform_4, window_bounds = array<i64: 1, 128>}, {transform_indices = @transform_5, window_bounds = array<i64: 128, 128>}]} {
    %c0 = arith.constant 0 : index
    %c0_0 = arith.constant 0 : index
    %0 = vector.load %arg1[%c0, %c0_0] : memref<128x5xi32, #tpu.memory_space<vmem>>, vector<128x5xi32>
    %1 = tpu.iota {dimensions = array<i32: 1>} : vector<128x128xi32>
    %cst = arith.constant 0.000000e+00 : f32
    %2 = vector.broadcast %cst : f32 to vector<128x128xf32>
    %3 = vector.extract_strided_slice %0 {offsets = [0, 0], sizes = [128, 1], strides = [1, 1]} : vector<128x5xi32> to vector<128x1xi32>
    %4 = vector.broadcast %3 : vector<128x1xi32> to vector<128x128xi32>
    %5 = arith.cmpi eq, %1, %4 : vector<128x128xi32>
    %6 = arith.extui %5 : vector<128x128xi1> to vector<128x128xi32>
    %7 = arith.sitofp %6 : vector<128x128xi32> to vector<128x128xf32>
    %8 = arith.truncf %7 : vector<128x128xf32> to vector<128x128xbf16>
    %c0_1 = arith.constant 0 : index
    %c0_2 = arith.constant 0 : index
    %c0_3 = arith.constant 0 : index
    %9 = vector.load %arg2[%c0_1, %c0_2, %c0_3] : memref<5x128x128xbf16, #tpu.memory_space<vmem>>, vector<1x128x128xbf16>
    %10 = vector.shape_cast %9 : vector<1x128x128xbf16> to vector<128x128xbf16>
    %cst_4 = arith.constant dense<0.000000e+00> : vector<128x128xf32>
    %11 = tpu.matmul %8, %10, %cst_4 {dimension_numbers = #tpu.dot_dimension_numbers<[1], [0], [0], [1], [0, 0, 1, 1], [], []>} : vector<128x128xbf16>, vector<128x128xbf16>, vector<128x128xf32> -> vector<128x128xf32>
    %12 = arith.addf %2, %11 : vector<128x128xf32>
    %13 = vector.extract_strided_slice %0 {offsets = [0, 1], sizes = [128, 1], strides = [1, 1]} : vector<128x5xi32> to vector<128x1xi32>
    %14 = vector.broadcast %13 : vector<128x1xi32> to vector<128x128xi32>
    %15 = arith.cmpi eq, %1, %14 : vector<128x128xi32>
    %16 = arith.extui %15 : vector<128x128xi1> to vector<128x128xi32>
    %17 = arith.sitofp %16 : vector<128x128xi32> to vector<128x128xf32>
    %18 = arith.truncf %17 : vector<128x128xf32> to vector<128x128xbf16>
    %c1 = arith.constant 1 : index
    %c0_5 = arith.constant 0 : index
    %c0_6 = arith.constant 0 : index
    %19 = vector.load %arg2[%c1, %c0_5, %c0_6] : memref<5x128x128xbf16, #tpu.memory_space<vmem>>, vector<1x128x128xbf16>
    %20 = vector.shape_cast %19 : vector<1x128x128xbf16> to vector<128x128xbf16>
    %cst_7 = arith.constant dense<0.000000e+00> : vector<128x128xf32>
    %21 = tpu.matmul %18, %20, %cst_7 {dimension_numbers = #tpu.dot_dimension_numbers<[1], [0], [0], [1], [0, 0, 1, 1], [], []>} : vector<128x128xbf16>, vector<128x128xbf16>, vector<128x128xf32> -> vector<128x128xf32>
    %22 = arith.addf %12, %21 : vector<128x128xf32>
    %23 = vector.extract_strided_slice %0 {offsets = [0, 2], sizes = [128, 1], strides = [1, 1]} : vector<128x5xi32> to vector<128x1xi32>
    %24 = vector.broadcast %23 : vector<128x1xi32> to vector<128x128xi32>
    %25 = arith.cmpi eq, %1, %24 : vector<128x128xi32>
    %26 = arith.extui %25 : vector<128x128xi1> to vector<128x128xi32>
    %27 = arith.sitofp %26 : vector<128x128xi32> to vector<128x128xf32>
    %28 = arith.truncf %27 : vector<128x128xf32> to vector<128x128xbf16>
    %c2 = arith.constant 2 : index
    %c0_8 = arith.constant 0 : index
    %c0_9 = arith.constant 0 : index
    %29 = vector.load %arg2[%c2, %c0_8, %c0_9] : memref<5x128x128xbf16, #tpu.memory_space<vmem>>, vector<1x128x128xbf16>
    %30 = vector.shape_cast %29 : vector<1x128x128xbf16> to vector<128x128xbf16>
    %cst_10 = arith.constant dense<0.000000e+00> : vector<128x128xf32>
    %31 = tpu.matmul %28, %30, %cst_10 {dimension_numbers = #tpu.dot_dimension_numbers<[1], [0], [0], [1], [0, 0, 1, 1], [], []>} : vector<128x128xbf16>, vector<128x128xbf16>, vector<128x128xf32> -> vector<128x128xf32>
    %32 = arith.addf %22, %31 : vector<128x128xf32>
    %33 = vector.extract_strided_slice %0 {offsets = [0, 3], sizes = [128, 1], strides = [1, 1]} : vector<128x5xi32> to vector<128x1xi32>
    %34 = vector.broadcast %33 : vector<128x1xi32> to vector<128x128xi32>
    %35 = arith.cmpi eq, %1, %34 : vector<128x128xi32>
    %36 = arith.extui %35 : vector<128x128xi1> to vector<128x128xi32>
    %37 = arith.sitofp %36 : vector<128x128xi32> to vector<128x128xf32>
    %38 = arith.truncf %37 : vector<128x128xf32> to vector<128x128xbf16>
    %c3 = arith.constant 3 : index
    %c0_11 = arith.constant 0 : index
    %c0_12 = arith.constant 0 : index
    %39 = vector.load %arg2[%c3, %c0_11, %c0_12] : memref<5x128x128xbf16, #tpu.memory_space<vmem>>, vector<1x128x128xbf16>
    %40 = vector.shape_cast %39 : vector<1x128x128xbf16> to vector<128x128xbf16>
    %cst_13 = arith.constant dense<0.000000e+00> : vector<128x128xf32>
    %41 = tpu.matmul %38, %40, %cst_13 {dimension_numbers = #tpu.dot_dimension_numbers<[1], [0], [0], [1], [0, 0, 1, 1], [], []>} : vector<128x128xbf16>, vector<128x128xbf16>, vector<128x128xf32> -> vector<128x128xf32>
    %42 = arith.addf %32, %41 : vector<128x128xf32>
    %43 = vector.extract_strided_slice %0 {offsets = [0, 4], sizes = [128, 1], strides = [1, 1]} : vector<128x5xi32> to vector<128x1xi32>
    %44 = vector.broadcast %43 : vector<128x1xi32> to vector<128x128xi32>
    %45 = arith.cmpi eq, %1, %44 : vector<128x128xi32>
    %46 = arith.extui %45 : vector<128x128xi1> to vector<128x128xi32>
    %47 = arith.sitofp %46 : vector<128x128xi32> to vector<128x128xf32>
    %48 = arith.truncf %47 : vector<128x128xf32> to vector<128x128xbf16>
    %c4 = arith.constant 4 : index
    %c0_14 = arith.constant 0 : index
    %c0_15 = arith.constant 0 : index
    %49 = vector.load %arg2[%c4, %c0_14, %c0_15] : memref<5x128x128xbf16, #tpu.memory_space<vmem>>, vector<1x128x128xbf16>
    %50 = vector.shape_cast %49 : vector<1x128x128xbf16> to vector<128x128xbf16>
    %cst_16 = arith.constant dense<0.000000e+00> : vector<128x128xf32>
    %51 = tpu.matmul %48, %50, %cst_16 {dimension_numbers = #tpu.dot_dimension_numbers<[1], [0], [0], [1], [0, 0, 1, 1], [], []>} : vector<128x128xbf16>, vector<128x128xbf16>, vector<128x128xf32> -> vector<128x128xf32>
    %52 = arith.addf %42, %51 : vector<128x128xf32>
    %c0_17 = arith.constant 0 : index
    %c0_18 = arith.constant 0 : index
    %53 = vector.load %arg3[%c0_17, %c0_18] : memref<1x128xf32, #tpu.memory_space<vmem>>, vector<1x128xf32>
    %54 = vector.broadcast %53 : vector<1x128xf32> to vector<128x128xf32>
    %55 = arith.addf %52, %54 : vector<128x128xf32>
    %56 = math.tanh %55 : vector<128x128xf32>
    %57 = arith.truncf %56 : vector<128x128xf32> to vector<128x128xbf16>
    %c0_19 = arith.constant 0 : index
    %c0_20 = arith.constant 0 : index
    %58 = vector.load %arg4[%c0_19, %c0_20] : memref<128x128xbf16, #tpu.memory_space<vmem>>, vector<128x128xbf16>
    %cst_21 = arith.constant dense<0.000000e+00> : vector<128x128xf32>
    %59 = tpu.matmul %57, %58, %cst_21 {dimension_numbers = #tpu.dot_dimension_numbers<[1], [0], [0], [1], [0, 0, 1, 1], [], []>} : vector<128x128xbf16>, vector<128x128xbf16>, vector<128x128xf32> -> vector<128x128xf32>
    %c0_22 = arith.constant 0 : index
    %c0_23 = arith.constant 0 : index
    %60 = vector.load %arg5[%c0_22, %c0_23] : memref<1x128xf32, #tpu.memory_space<vmem>>, vector<1x128xf32>
    %61 = vector.broadcast %60 : vector<1x128xf32> to vector<128x128xf32>
    %62 = arith.addf %59, %61 : vector<128x128xf32>
    %cst_24 = arith.constant dense<0xFF800000> : vector<128xf32>
    %63 = vector.multi_reduction <maximumf>, %62, %cst_24 [1] : vector<128x128xf32> to vector<128xf32>
    %64 = vector.shape_cast %63 : vector<128xf32> to vector<128x1xf32>
    %65 = vector.broadcast %64 : vector<128x1xf32> to vector<128x128xf32>
    %66 = arith.subf %62, %65 : vector<128x128xf32>
    %67 = math.exp %66 : vector<128x128xf32>
    %cst_25 = arith.constant dense<0.000000e+00> : vector<128xf32>
    %68 = vector.multi_reduction <add>, %67, %cst_25 [1] : vector<128x128xf32> to vector<128xf32>
    %69 = vector.shape_cast %68 : vector<128xf32> to vector<128x1xf32>
    %70 = math.log %69 : vector<128x1xf32>
    %71 = vector.broadcast %70 : vector<128x1xf32> to vector<128x128xf32>
    %72 = arith.subf %66, %71 : vector<128x128xf32>
    %c0_26 = arith.constant 0 : index
    %c0_27 = arith.constant 0 : index
    %73 = vector.load %arg6[%c0_26, %c0_27] : memref<128x128xf32, #tpu.memory_space<vmem>>, vector<128x128xf32>
    tpu.vector_store %arg6[%c0_26, %c0_27], %72 {strides = array<i32>} : memref<128x128xf32, #tpu.memory_space<vmem>>, vector<128x128xf32>,
    return
  }
  func.func @transform_0(%arg0: i32) -> (i32, i32) {
    %c0_i32 = arith.constant 0 : i32
    %c0_i32_0 = arith.constant 0 : i32
    return %arg0, %c0_i32 : i32, i32
  }
  func.func @transform_1(%arg0: i32) -> (i32, i32, i32) {
    %c0_i32 = arith.constant 0 : i32
    %c0_i32_0 = arith.constant 0 : i32
    %c0_i32_1 = arith.constant 0 : i32
    %c0_i32_2 = arith.constant 0 : i32
    return %c0_i32, %c0_i32_0, %c0_i32_1 : i32, i32, i32
  }
  func.func @transform_2(%arg0: i32) -> (i32, i32) {
    %c0_i32 = arith.constant 0 : i32
    %c0_i32_0 = arith.constant 0 : i32
    %c0_i32_1 = arith.constant 0 : i32
    return %c0_i32, %c0_i32_0 : i32, i32
  }
  func.func @transform_3(%arg0: i32) -> (i32, i32) {
    %c0_i32 = arith.constant 0 : i32
    %c0_i32_0 = arith.constant 0 : i32
    %c0_i32_1 = arith.constant 0 : i32
    return %c0_i32, %c0_i32_0 : i32, i32
  }
  func.func @transform_4(%arg0: i32) -> (i32, i32) {
    %c0_i32 = arith.constant 0 : i32
    %c0_i32_0 = arith.constant 0 : i32
    %c0_i32_1 = arith.constant 0 : i32
    return %c0_i32, %c0_i32_0 : i32, i32
  }
  func.func @transform_5(%arg0: i32) -> (i32, i32) {
    %c0_i32 = arith.constant 0 : i32
    %c0_i32_0 = arith.constant 0 : i32
    return %arg0, %c0_i32 : i32, i32
  }
}

</mosaic_0001>

<bundles_post_ra>
// kernel: my_model_forward.1
= control target key start
LH: loop header
LB: loop body
LE: loop exit
PB: predicated region body
PF: predicated region fallthrough
CT: control target
= control target key end

     0   :  { %10 = vsyncpa [#allocation3], 0  ;;  %s2504_s18 = smov 0   ;;  %s3113_s0 = inlined_call_operand.vmem [shape: s32[256,5], index: 0, kind: input, shape index: {}]   ;;  %s3114_s1 = inlined_call_operand.hbm [shape: bf16[5,128,128], index: 1, kind: input, shape index: {}]   ;;  %s3115_s2 = inlined_call_operand.vmem [shape: f32[1,128], index: 2, kind: input, shape index: {}]   ;;  %s3116_s3 = inlined_call_operand.vmem [shape: bf16[128,128], index: 3, kind: input, shape index: {}]   ;;  %s3117_s4 = inlined_call_operand.vmem [shape: f32[1,128], index: 4, kind: input, shape index: {}]   ;;  %s3118_s5 = inlined_call_operand.vmem [shape: f32[256,128], index: 5, kind: output, shape index: {}]  }
   0x1 LB: > { %s168_s21 = sshll.u32 %s3114_s1, 4  ;;  %s1805_s22 = sadd.s32 4294967295, %s2463_s18   ;;  %s2463_s18 = sphi %s2504_s18, %s16_s18   ;;  %s169_s21 = int_to_ptr.hbm [resolvable:$true] %s168_s21 }
   0x2   : > { %p1807_p0 = scmp.ge.s32.totalorder %s2463_s18, 1  ;;  %p157_p1 = scmp.lt.s32.totalorder %s2463_s18, 3 }
   0x3   : > { %p2242_p2 = scmp.eq.s32.totalorder %s1805_s22, 0  ;;  %s2465_s23 = smov [#allocation2]  }
   0x4   : > { %p158_p3 = pnand %p1807_p0, %p157_p1  ;;  %s170_s24 = sshll.u32 %s2465_s23, 4  ;;  %s171_s24 = int_to_ptr.vmem [resolvable:$true] %s170_s24 }
   0x5   : > { %s2466_s25 = smov 64   ;;  %s2467_s26 = smov 4  }
   0x6   : > { %p2238_p4 = pneg %p158_p3  ;;  %204 = sbr.rel (%p158_p3) target bundleno = 940 (0x3ac), region = 40 }
   0x8   : > { %p2239_p5 = pnand %p2242_p2, %p2238_p4 }
   0xa   : > { %2241 = dma.hbm_to_vmem [thread:$0]  (!%p2239_p5), %s169_s21, 5120, %s171_s24, [#allocation3], %s2466_s25, %s2466_s25, %s2467_s26  }
   0xb   : > { %2458 = dma.done.wait (%p2242_p2), [#allocation3], 5120  }
   0xc   : > { %2460 = vsyncadd (%p2242_p2), [#allocation3], 4294962176  ;;  %s1812_s27 = sshll.u32 %s1805_s22, 4  ;;  %v2468_v0 = vmov 0   ;;  %v2469_v1 = vmov 1   ;;  %v2185_v15 = vld [vmem:[#allocation2 + $0x78] sm:$0xff]  ;;  %v261_v37 = vlaneseq }
   0xd   : > { %2265 = vset.pattern.permute.xlu0 %v2468_v0  ;;  %2261 = vset.pattern.permute.xlu1 %v2468_v0  ;;  %p234_p6 = scmp.lt.s32.totalorder %s1812_s27, 31  ;;  %v2184_v18 = vld [vmem:[#allocation2 + $0x70] sm:$0xff]  ;;  %v2177_v19 = vld [vmem:[#allocation2 + $0x38] sm:$0xff]  ;;  %v2470_v20 = vmov 4   ;;  %v2183_v21 = vld [vmem:[#allocation2 + $0x68] sm:$0xff]  ;;  %v2471_v24 = vmov 3  }
   0xe   : > { %2262 = vset.pattern.permute.xlu2 %v2469_v1  ;;  %552 = vmatpush.bf16.msra.mxu0 %v2185_v15  ;;  %v2182_v22 = vld [vmem:[#allocation2 + $0x60] sm:$0xff]  ;;  %v2176_v23 = vld [vmem:[#allocation2 + $0x30] sm:$0xff]  ;;  %v2181_v26 = vld [vmem:[#allocation2 + $0x58] sm:$0xff]  ;;  %v2472_v28 = vmov 2   ;;  %v2628_v39 = vand.u32 127, %v261_v37 }
   0xf   : > { %s3120_s27 = smov (!%p234_p6, %s1812_s27), 31  ;;  %2218 = vmatpush.bf16.msra.mxu2 %v2185_v15  ;;  %2226 = vmatpush.bf16.msra.mxu3 %v2177_v19  ;;  %v2175_v27 = vld [vmem:[#allocation2 + $0x28] sm:$0xff]  ;;  %v2180_v29 = vld [vmem:[#allocation2 + $0x50] sm:$0xff]  ;;  %v2174_v30 = vld [vmem:[#allocation2 + $0x20] sm:$0xff]  ;;  %v2473_v41 = vmov 1.0|1.0  }
  0x10   : > { %s1813_s28 = sshll.u32 %s3120_s27, 3  ;;  %649 = vmatpush.bf16.msra.mxu1 %v2177_v19  ;;  %v2179_v31 = vld [vmem:[#allocation2 + $0x48] sm:$0xff]  ;;  %v2173_v32 = vld [vmem:[#allocation2 + $0x18] sm:$0xff]  ;;  %v2178_v33 = vld [vmem:[#allocation2 + $0x40] sm:$0xff] }
  0x11   : > { %s2526_s6 = scalar_lea.vmem %s3113_s0, %s1813_s28  ;;  %v2172_v34 = vld [vmem:[#allocation2 + $0x10] sm:$0xff]  ;;  %v2171_v35 = vld [vmem:[#allocation2 + $0x8] sm:$0xff]  ;;  %v2170_v36 = vld [vmem:[#allocation2] sm:$0xff]  ;;  %s3068_s7 = scalar_lea.vmem %s3118_s5, %s1813_s28 }
  0x12   : > { %v2529_v2 = vld [vmem:[%s2526_s6 + $0x58] sm:$0xff]  ;;  %v2532_v3 = vld [vmem:[%s2526_s6 + $0x40] sm:$0xff]  ;;  %v2544_v6 = vld [vmem:[%s2526_s6 + $0x48] sm:$0xff]  ;;  %553 = vmatpush.bf16.msra.mxu0 %v2184_v18 }
  0x13   : > { %297 = vperm.xlu0 %2265, %v2529_v2   ;;  %288 = vperm.xlu1 %2261, %v2532_v3   ;;  %v2537_v4 = vld [vmem:[%s2526_s6] sm:$0xff]  ;;  %v2547_v7 = vld [vmem:[%s2526_s6 + $0x8] sm:$0xff]  ;;  %v2555_v8 = vld [vmem:[%s2526_s6 + $0x50] sm:$0xff] }
  0x14   : > { %384 = vperm.xlu2 %2262, %v2537_v4   ;;  %v2541_v5 = vld [vmem:[%s2526_s6 + $0x60] sm:$0xff]  ;;  %v2562_v9 = vld [vmem:[%s2526_s6 + $0x10] sm:$0xff]  ;;  %v2567_v10 = vld [vmem:[%s2526_s6 + $0x18] sm:$0xff]  ;;  %2219 = vmatpush.bf16.msra.mxu2 %v2184_v18 }
  0x15   : > { %v2574_v11 = vld [vmem:[%s2526_s6 + $0x68] sm:$0xff]  ;;  %v2583_v13 = vld [vmem:[%s2526_s6 + $0x20] sm:$0xff]  ;;  %v2588_v14 = vld [vmem:[%s2526_s6 + $0x30] sm:$0xff]  ;;  %2227 = vmatpush.bf16.msra.mxu3 %v2176_v23  ;;  %650 = vmatpush.bf16.msra.mxu1 %v2176_v23 }
  0x16   : > { %v2578_v12 = vld [vmem:[%s2526_s6 + $0x28] sm:$0xff]  ;;  %v2591_v16 = vld [vmem:[%s2526_s6 + $0x70] sm:$0xff]  ;;  %v2595_v17 = vld [vmem:[%s2526_s6 + $0x78] sm:$0xff]  ;;  %554 = vmatpush.bf16.msra.mxu0 %v2183_v21 }
  0x17   : > { %v2608_v25 = vld [vmem:[%s2526_s6 + $0x38] sm:$0xff]  ;;  %v2200_v53 = vld [vmem:[#allocation2 + $0xf0] sm:$0xff]  ;;  %v2199_v56 = vld [vmem:[#allocation2 + $0xe8] sm:$0xff] }
  0x18   : > { %2220 = vmatpush.bf16.msra.mxu2 %v2183_v21  ;;  %v2201_v49 = vld [vmem:[#allocation2 + $0xf8] sm:$0xff]  ;;  %v2198_v59 = vld [vmem:[#allocation2 + $0xe0] sm:$0xff]  ;;  %v2192_v60 = vld [vmem:[#allocation2 + $0xb0] sm:$0xff] }
  0x19   : > { %2228 = vmatpush.bf16.msra.mxu3 %v2175_v27  ;;  %651 = vmatpush.bf16.msra.mxu1 %v2175_v27  ;;  %v2193_v57 = vld [vmem:[#allocation2 + $0xb8] sm:$0xff]  ;;  %v2190_v15 = vld [vmem:[#allocation2 + $0xa0] sm:$0xff]  ;;  %v2195_v18 = vld [vmem:[#allocation2 + $0xc8] sm:$0xff] }
  0x1a   : > { %555 = vmatpush.bf16.msra.mxu0 %v2182_v22  ;;  %v2209_v61 = vld [vmem:[#allocation2 + $0x138] sm:$0xff]  ;;  %v2207_v19 = vld [vmem:[#allocation2 + $0x128] sm:$0xff]  ;;  %v2194_v23 = vld [vmem:[#allocation2 + $0xc0] sm:$0xff] }
  0x1b   : > { %300 = vperm.xlu0 %2265, %v2541_v5   ;;  %291 = vperm.xlu1 %2261, %v2544_v6   ;;  %v2189_v21 = vld [vmem:[#allocation2 + $0x98] sm:$0xff]  ;;  %v2188_v27 = vld [vmem:[#allocation2 + $0x90] sm:$0xff]  ;;  %v2203_v37 = vld [vmem:[#allocation2 + $0x108] sm:$0xff] }
  0x1c   : > { %387 = vperm.xlu2 %2262, %v2547_v7   ;;  %2221 = vmatpush.bf16.msra.mxu2 %v2182_v22 }
  0x1d   : > { %2229 = vmatpush.bf16.msra.mxu3 %v2174_v30  ;;  %652 = vmatpush.bf16.msra.mxu1 %v2174_v30  ;;  %v2205_v30 = vld [vmem:[#allocation2 + $0x118] sm:$0xff] }
  0x1e   : > { %556 = vmatpush.bf16.msra.mxu0 %v2181_v26 }
  0x20   : > { %2222 = vmatpush.bf16.msra.mxu2 %v2181_v26  ;;  %v2206_v26 = vld [vmem:[#allocation2 + $0x120] sm:$0xff] }
  0x21   : > { %2230 = vmatpush.bf16.msra.mxu3 %v2173_v32  ;;  %653 = vmatpush.bf16.msra.mxu1 %v2173_v32 }
  0x22   : > { %557 = vmatpush.bf16.msra.mxu0 %v2180_v29 }
  0x23   : > { %2267 = vset.pattern.permute.xlu0 %v2469_v1  ;;  %2263 = vset.pattern.permute.xlu1 %v2469_v1 }
  0x24   : > { %408 = vperm.xlu0 %2267, %v2532_v3   ;;  %417 = vperm.xlu1 %2263, %v2529_v2  }
  0x25   : > { %2264 = vset.pattern.permute.xlu2 %v2468_v0  ;;  %2223 = vmatpush.bf16.msra.mxu2 %v2180_v29 }
  0x26   : > { %294 = vperm.xlu2 %2264, %v2555_v8   ;;  %558 = vmatpush.bf16.msra.mxu0 %v2179_v31 }
  0x27   : > { %2231 = vmatpush.bf16.msra.mxu3 %v2172_v34  ;;  %654 = vmatpush.bf16.msra.mxu1 %v2172_v34  ;;  %v2204_v34 = vld [vmem:[#allocation2 + $0x110] sm:$0xff] }
  0x29   : > { %2224 = vmatpush.bf16.msra.mxu2 %v2179_v31  ;;  %v2187_v31 = vld [vmem:[#allocation2 + $0x88] sm:$0xff] }
  0x2a   : > { %559 = vmatpush.bf16.msra.mxu0 %v2178_v33 }
  0x2b   : > { %2232 = vmatpush.bf16.msra.mxu3 %v2171_v35  ;;  %655 = vmatpush.bf16.msra.mxu1 %v2171_v35  ;;  %v2186_v35 = vld [vmem:[#allocation2 + $0x80] sm:$0xff] }
  0x2c   : > { %411 = vperm.xlu0 %2267, %v2544_v6   ;;  %390 = vperm.xlu1 %2263, %v2562_v9  }
  0x2d   : > { %2225 = vmatpush.bf16.msra.mxu2 %v2178_v33 }
  0x2e   : > { %2266 = vset.pattern.permute.xlu2 %v2469_v1  ;;  %1335 = vmatpush.bf16.msrb.mxu0 %v2209_v61 }
  0x2f   : > { %393 = vperm.xlu2 %2266, %v2567_v10   ;;  %2233 = vmatpush.bf16.msra.mxu3 %v2170_v36 }
  0x30   : > { %656 = vmatpush.bf16.msra.mxu1 %v2170_v36 }
  0x31   : > { %867 = vmatpush.bf16.msrb.mxu2 %v2193_v57 }
  0x33   : > { %1101 = vmatpush.bf16.msrb.mxu3 %v2201_v49 }
  0x34   : > { %414 = vperm.xlu0 %2267, %v2555_v8   ;;  %420 = vperm.xlu1 %2263, %v2541_v5  }
  0x35   : > { %868 = vmatpush.bf16.msrb.mxu2 %v2192_v60 }
  0x37   : > { %423 = vperm.xlu2 %2266, %v2574_v11   ;;  %1102 = vmatpush.bf16.msrb.mxu3 %v2200_v53 }
  0x3b   : > { %1103 = vmatpush.bf16.msrb.mxu3 %v2199_v56 }
  0x3c   : > { %399 = vperm.xlu0 %2267, %v2578_v12   ;;  %2268 = vset.pattern.permute.xlu1 %v2468_v0 }
  0x3d   : > { %303 = vperm.xlu1 %2268, %v2574_v11  }
  0x3f   : > { %396 = vperm.xlu2 %2266, %v2583_v13   ;;  %1104 = vmatpush.bf16.msrb.mxu3 %v2198_v59 }
  0x44   : > { %402 = vperm.xlu0 %2267, %v2588_v14  }
  0x45   : > { %2269 = vset.pattern.permute.xlu1 %v2469_v1 }
  0x46   : > { %426 = vperm.xlu1 %2269, %v2591_v16  }
  0x47   : > { %429 = vperm.xlu2 %2266, %v2595_v17  }
  0x4c   : > { %2278 = vset.pattern.permute.xlu0 %v2470_v20 }
  0x4d   : > { %1167 = vperm.xlu0 %2278, %v2537_v4  }
  0x4e   : > { %2270 = vset.pattern.permute.xlu1 %v2468_v0 }
  0x4f   : > { %306 = vperm.xlu1 %2270, %v2591_v16   ;;  %2271 = vset.pattern.permute.xlu2 %v2468_v0 }
  0x50   : > { %309 = vperm.xlu2 %2271, %v2595_v17  }
  0x55   : > { %2283 = vset.pattern.permute.xlu0 %v2471_v24 }
  0x56   : > { %942 = vperm.xlu0 %2283, %v2567_v10  }
  0x57   : > { %2272 = vset.pattern.permute.xlu1 %v2469_v1  ;;  %v2197_v1 = vld [vmem:[#allocation2 + $0xd8] sm:$0xff] }
  0x58   : > { %405 = vperm.xlu1 %2272, %v2608_v25   ;;  %2273 = vset.pattern.permute.xlu2 %v2472_v28 }
  0x59   : > { %699 = vperm.xlu2 %2273, %v2537_v4   ;;  %1105 = vmatpush.bf16.msrb.mxu3 %v2197_v1 }
  0x5e   : > { %2284 = vset.pattern.permute.xlu0 %v2472_v28 }
  0x5f   : > { %702 = vperm.xlu0 %2284, %v2547_v7  }
  0x60   : > { %2274 = vset.pattern.permute.xlu1 %v2471_v24 }
  0x61   : > { %933 = vperm.xlu1 %2274, %v2537_v4   ;;  %2275 = vset.pattern.permute.xlu2 %v2471_v24 }
  0x62   : > { %936 = vperm.xlu2 %2275, %v2547_v7  }
  0x67   : > { %711 = vperm.xlu0 %2284, %v2583_v13  }
  0x69   : > { %2276 = vset.pattern.permute.xlu1 %v2468_v0 }
  0x6a   : > { %264 = vperm.xlu1 %2276, %v2537_v4   ;;  %2277 = vset.pattern.permute.xlu2 %v2468_v0  ;;  %v2191_v4 = vld [vmem:[#allocation2 + $0xa8] sm:$0xff] }
  0x6b   : > { %267 = vperm.xlu2 %2277, %v2547_v7   ;;  %869 = vmatpush.bf16.msrb.mxu2 %v2191_v4 }
  0x6e   : > { %v385_v38 = vpop.permute.xlu2 %384 }
  0x6f   : > { %2293 = vset.pattern.permute.xlu0 %v2468_v0  ;;  %vm431_vm0 = vcmp.eq.s32.totalorder %v2628_v39, %v385_v38  ;;  %870 = vmatpush.bf16.msrb.mxu2 %v2190_v15 }
  0x70   : > { %279 = vperm.xlu0 %2293, %v2578_v12  }
  0x72   : > { %2279 = vset.pattern.permute.xlu1 %v2470_v20 }
  0x73   : > { %1170 = vperm.xlu1 %2279, %v2547_v7   ;;  %2280 = vset.pattern.permute.xlu2 %v2472_v28 }
  0x74   : > { %705 = vperm.xlu2 %2280, %v2562_v9   ;;  %871 = vmatpush.bf16.msrb.mxu2 %v2189_v21 }
  0x76   : > { %v388_v40 = vpop.permute.xlu2 %387 }
  0x77   : > { %vm432_vm1 = vcmp.eq.s32.totalorder %v2628_v39, %v388_v40  ;;  %v2202_v40 = vld [vmem:[#allocation2 + $0x100] sm:$0xff] }
  0x78   : > { %vm1880_vm2 = vmpackc.low %vm432_vm1, %vm431_vm0  ;;  %2298 = vset.pattern.permute.xlu0 %v2471_v24  ;;  %872 = vmatpush.bf16.msrb.mxu2 %v2188_v27 }
  0x79   : > { %1881 = vmatmul.msk.bf16.vlgmr.msra.gmra.mxu0 %vm1880_vm2, %v2473_v41  ;;  %951 = vperm.xlu0 %2298, %v2588_v14  }
  0x7b   : > { %2281 = vset.pattern.permute.xlu1 %v2472_v28 }
  0x7c   : > { %708 = vperm.xlu1 %2281, %v2567_v10   ;;  %2282 = vset.pattern.permute.xlu2 %v2471_v24 }
  0x7d   : > { %939 = vperm.xlu2 %2282, %v2562_v9   ;;  %873 = vmatpush.bf16.msrb.mxu2 %v2187_v31 }
  0x80   : > { %v295_v42 = vpop.permute.xlu2 %294 }
  0x81   : > { %2303 = vset.pattern.permute.xlu0 %v2470_v20  ;;  %vm321_vm7 = vcmp.eq.s32.totalorder %v2628_v39, %v295_v42  ;;  %874 = vmatpush.bf16.msrb.mxu2 %v2186_v35 }
  0x82   : > { %1188 = vperm.xlu0 %2303, %v2608_v25  }
  0x84   : > { %2285 = vset.pattern.permute.xlu1 %v2468_v0 }
  0x85   : > { %v289_v43 = vpop.permute.xlu1 %288  ;;  %270 = vperm.xlu1 %2285, %v2562_v9   ;;  %v298_v44 = vpop.permute.xlu0 %297  ;;  %2286 = vset.pattern.permute.xlu2 %v2468_v0 }
  0x86   : > { %273 = vperm.xlu2 %2286, %v2567_v10   ;;  %vm319_vm3 = vcmp.eq.s32.totalorder %v2628_v39, %v289_v43  ;;  %vm322_vm6 = vcmp.eq.s32.totalorder %v2628_v39, %v298_v44 }
  0x87   : > { %vm1938_vm8 = vmpackc.low %vm322_vm6, %vm321_vm7 }
  0x89   : > { %v394_v45 = vpop.permute.xlu2 %393 }
  0x8a   : > { %1191 = vperm.xlu0 %2303, %v2532_v3   ;;  %vm434_vm10 = vcmp.eq.s32.totalorder %v2628_v39, %v394_v45 }
  0x8d   : > { %v292_v46 = vpop.permute.xlu1 %291  ;;  %2287 = vset.pattern.permute.xlu1 %v2470_v20  ;;  %v2651_v47 = vpop.permute.xlu0 %300 }
  0x8e   : > { %vm320_vm4 = vcmp.eq.s32.totalorder %v2628_v39, %v292_v46  ;;  %1173 = vperm.xlu1 %2287, %v2562_v9   ;;  %2288 = vset.pattern.permute.xlu2 %v2470_v20  ;;  %v2196_v9 = vld [vmem:[#allocation2 + $0xd0] sm:$0xff]  ;;  %vm323_vm0 = vcmp.eq.s32.totalorder %v2628_v39, %v2651_v47 }
  0x8f   : > { %vm1936_vm5 = vmpackc.low %vm320_vm4, %vm319_vm3  ;;  %1176 = vperm.xlu2 %2288, %v2567_v10   ;;  %v2208_v10 = vld [vmem:[#allocation2 + $0x130] sm:$0xff]  ;;  %1106 = vmatpush.bf16.msrb.mxu3 %v2196_v9 }
  0x90   : > { %1937 = vmatmul.msk.bf16.vlgmr.msra.gmra.mxu3 %vm1936_vm5, %v2473_v41  ;;  %1336 = vmatpush.bf16.msrb.mxu0 %v2208_v10 }
  0x91   : > { %v2659_v48 = vpop.permute.xlu2 %423 }
  0x92   : > { %2310 = vset.pattern.permute.xlu0 %v2472_v28 }
  0x93   : > { %732 = vperm.xlu0 %2310, %v2529_v2   ;;  %1107 = vmatpush.bf16.msrb.mxu3 %v2195_v18 }
  0x94   : > { %1337 = vmatpush.bf16.msrb.mxu0 %v2207_v19 }
  0x96   : > { %v409_v50 = vpop.permute.xlu0 %408  ;;  %v418_v51 = vpop.permute.xlu1 %417  ;;  %2289 = vset.pattern.permute.xlu1 %v2472_v28 }
  0x97   : > { %714 = vperm.xlu1 %2289, %v2578_v12   ;;  %2290 = vset.pattern.permute.xlu2 %v2471_v24  ;;  %vm439_vm9 = vcmp.eq.s32.totalorder %v2628_v39, %v409_v50  ;;  %vm442_vm1 = vcmp.eq.s32.totalorder %v2628_v39, %v418_v51 }
  0x98   : > { %945 = vperm.xlu2 %2290, %v2583_v13   ;;  %1108 = vmatpush.bf16.msrb.mxu3 %v2194_v23  ;;  %v2217_v23 = vld [vmem:[%s3116_s3 + $0x38] sm:$0xff] }
  0x99   : > { %v397_v52 = vpop.permute.xlu2 %396  ;;  %1338 = vmatpush.bf16.msrb.mxu0 %v2206_v26  ;;  %1512 = vmatpush.bf16.msrb.mxu1 %v2217_v23 }
  0x9a   : > { %vm435_vm2 = vcmp.eq.s32.totalorder %v2628_v39, %v397_v52 }
  0x9b   : > { %735 = vperm.xlu0 %2310, %v2541_v5  }
  0x9d   : > { %1339 = vmatpush.bf16.msrb.mxu0 %v2205_v30  ;;  %v2216_v30 = vld [vmem:[%s3116_s3 + $0x30] sm:$0xff] }
  0x9e   : > { %v412_v54 = vpop.permute.xlu0 %411  ;;  %v391_v55 = vpop.permute.xlu1 %390  ;;  %1513 = vmatpush.bf16.msrb.mxu1 %v2216_v30 }
  0x9f   : > { %vm440_vm11 = vcmp.eq.s32.totalorder %v2628_v39, %v412_v54  ;;  %vm433_vm12 = vcmp.eq.s32.totalorder %v2628_v39, %v391_v55  ;;  %2291 = vset.pattern.permute.xlu1 %v2471_v24 }
  0xa0   : > { %vm1888_vm13 = vmpackc.low %vm440_vm11, %vm439_vm9  ;;  %948 = vperm.xlu1 %2291, %v2578_v12   ;;  %1939 = vmatmul.msk.bf16.gmra.mxu3 %vm1938_vm8, %v2473_v41  ;;  %vm444_vm8 = vcmp.eq.s32.totalorder %v2628_v39, %v2659_v48 }
  0xa1   : > { %vm1882_vm14 = vmpackc.low %vm434_vm10, %vm433_vm12  ;;  %1889 = vmatmul.msk.bf16.vlgmr.msra.gmra.mxu2 %vm1888_vm13, %v2473_v41  ;;  %2292 = vset.pattern.permute.xlu2 %v2468_v0  ;;  %v2680_v58 = vpop.permute.xlu2 %429 }
  0xa2   : > { %1883 = vmatmul.msk.bf16.gmra.mxu0 %vm1882_vm14, %v2473_v41  ;;  %276 = vperm.xlu2 %2292, %v2583_v13  }
  0xa3   : > { %2317 = vset.pattern.permute.xlu0 %v2471_v24  ;;  %1340 = vmatpush.bf16.msrb.mxu0 %v2204_v34  ;;  %v2215_v34 = vld [vmem:[%s3116_s3 + $0x28] sm:$0xff] }
  0xa4   : > { %972 = vperm.xlu0 %2317, %v2574_v11   ;;  %1514 = vmatpush.bf16.msrb.mxu1 %v2215_v34 }
  0xa6   : > { %v415_v62 = vpop.permute.xlu0 %414  ;;  %v2685_v63 = vpop.permute.xlu1 %420 }
  0xa7   : > { %vm441_vm15 = vcmp.eq.s32.totalorder %v2628_v39, %v415_v62  ;;  %vm443_vm9 = vcmp.eq.s32.totalorder %v2628_v39, %v2685_v63  ;;  %1341 = vmatpush.bf16.msrb.mxu0 %v2203_v37 }
  0xa8   : > { %2294 = vset.pattern.permute.xlu1 %v2470_v20  ;;  %vm1890_vm3 = vmpackc.low %vm442_vm1, %vm441_vm15 }
  0xa9   : > { %1179 = vperm.xlu1 %2294, %v2583_v13   ;;  %vm1892_vm10 = vmpackc.low %vm444_vm8, %vm443_vm9 }
  0xaa   : > { %2295 = vset.pattern.permute.xlu2 %v2470_v20  ;;  %v2690_v7 = vpop.permute.xlu2 %309 }
  0xab   : > { %1182 = vperm.xlu2 %2295, %v2578_v12   ;;  %vm326_vm11 = vcmp.eq.s32.totalorder %v2628_v39, %v2690_v7  ;;  %1342 = vmatpush.bf16.msrb.mxu0 %v2202_v40  ;;  %v2214_v40 = vld [vmem:[%s3116_s3 + $0x20] sm:$0xff] }
  0xac   : > { %975 = vperm.xlu0 %2317, %v2591_v16   ;;  %1515 = vmatpush.bf16.msrb.mxu1 %v2214_v40 }
  0xae   : > { %v400_v13 = vpop.permute.xlu0 %399 }
  0xaf   : > { %vm436_vm4 = vcmp.eq.s32.totalorder %v2628_v39, %v400_v13  ;;  %v304_v12 = vpop.permute.xlu1 %303 }
  0xb0   : > { %vm1884_vm5 = vmpackc.low %vm436_vm4, %vm435_vm2  ;;  %vm324_vm6 = vcmp.eq.s32.totalorder %v2628_v39, %v304_v12  ;;  %vm446_vm2 = vcmp.eq.s32.totalorder %v2628_v39, %v2680_v58 }
  0xb1   : > { %vm1940_vm7 = vmpackc.low %vm324_vm6, %vm323_vm0  ;;  %1891 = vmatmul.msk.bf16.gmra.mxu2 %vm1890_vm3, %v2473_v41  ;;  %2296 = vset.pattern.permute.xlu1 %v2472_v28 }
  0xb2   : > { %1885 = vmatmul.msk.bf16.gmra.mxu0 %vm1884_vm5, %v2473_v41  ;;  %717 = vperm.xlu1 %2296, %v2588_v14  }
  0xb3   : > { %1941 = vmatmul.msk.bf16.gmra.mxu3 %vm1940_vm7, %v2473_v41  ;;  %2297 = vset.pattern.permute.xlu2 %v2472_v28  ;;  %v2707_v22 = vpop.permute.xlu2 %699 }
  0xb4   : > { %720 = vperm.xlu2 %2297, %v2608_v25   ;;  %2324 = vset.pattern.permute.xlu0 %v2470_v20  ;;  %vm746_vm8 = vcmp.eq.s32.totalorder %v2628_v39, %v2707_v22 }
  0xb5   : > { %1212 = vperm.xlu0 %2324, %v2595_v17  }
  0xb6   : > { %v403_v32 = vpop.permute.xlu0 %402 }
  0xb7   : > { %vm437_vm14 = vcmp.eq.s32.totalorder %v2628_v39, %v403_v32 }
  0xb8   : > { %v427_v29 = vpop.permute.xlu1 %426 }
  0xb9   : > { %vm445_vm1 = vcmp.eq.s32.totalorder %v2628_v39, %v427_v29 }
  0xba   : > { %2299 = vset.pattern.permute.xlu1 %v2471_v24  ;;  %vm1894_vm3 = vmpackc.low %vm446_vm2, %vm445_vm1 }
  0xbb   : > { %954 = vperm.xlu1 %2299, %v2608_v25  }
  0xbc   : > { %v937_v33 = vpop.permute.xlu2 %936  ;;  %2300 = vset.pattern.permute.xlu2 %v2468_v0 }
  0xbd   : > { %282 = vperm.xlu2 %2300, %v2588_v14   ;;  %vm981_vm4 = vcmp.eq.s32.totalorder %v2628_v39, %v937_v33 }
  0xbf   : > { %v1168_v42 = vpop.permute.xlu0 %1167 }
  0xc1   : > { %v307_v36 = vpop.permute.xlu1 %306  ;;  %1893 = vmatmul.msk.bf16.gmra.mxu2 %vm1892_vm10, %v2473_v41 }
  0xc2   : > { %vm325_vm12 = vcmp.eq.s32.totalorder %v2628_v39, %v307_v36 }
  0xc3   : > { %vm1942_vm13 = vmpackc.low %vm326_vm11, %vm325_vm12  ;;  %2301 = vset.pattern.permute.xlu1 %v2468_v0 }
  0xc4   : > { %285 = vperm.xlu1 %2301, %v2608_v25   ;;  %1943 = vmatmul.msk.bf16.gmra.mxu3 %vm1942_vm13, %v2473_v41 }
  0xc5   : > { %v268_v38 = vpop.permute.xlu2 %267  ;;  %2302 = vset.pattern.permute.xlu2 %v2470_v20 }
  0xc6   : > { %1185 = vperm.xlu2 %2302, %v2588_v14   ;;  %vm312_vm7 = vcmp.eq.s32.totalorder %v2628_v39, %v268_v38 }
  0xc8   : > { %v943_v14 = vpop.permute.xlu0 %942 }
  0xc9   : > { %vm983_vm12 = vcmp.eq.s32.totalorder %v2628_v39, %v943_v14  ;;  %v2213_v14 = vld [vmem:[%s3116_s3 + $0x18] sm:$0xff] }
  0xca   : > { %v406_v43 = vpop.permute.xlu1 %405  ;;  %1516 = vmatpush.bf16.msrb.mxu1 %v2213_v14 }
  0xcb   : > { %vm438_vm15 = vcmp.eq.s32.totalorder %v2628_v39, %v406_v43 }
  0xcc   : > { %vm1886_vm0 = vmpackc.low %vm438_vm15, %vm437_vm14  ;;  %2304 = vset.pattern.permute.xlu1 %v2472_v28 }
  0xcd   : > { %723 = vperm.xlu1 %2304, %v2532_v3   ;;  %1887 = vmatmul.msk.bf16.gmra.mxu0 %vm1886_vm0, %v2473_v41  ;;  %vm1214_vm0 = vcmp.eq.s32.totalorder %v2628_v39, %v1168_v42 }
  0xce   : > { %v706_v0 = vpop.permute.xlu2 %705  ;;  %2305 = vset.pattern.permute.xlu2 %v2472_v28 }
  0xcf   : > { %726 = vperm.xlu2 %2305, %v2544_v6  }
  0xd1   : > { %1895 = vmatmul.msk.bf16.gmra.mxu2 %vm1894_vm3, %v2473_v41  ;;  %v703_v45 = vpop.permute.xlu0 %702  ;;  %vm748_vm3 = vcmp.eq.s32.totalorder %v2628_v39, %v706_v0 }
  0xd2   : > { %vm747_vm9 = vcmp.eq.s32.totalorder %v2628_v39, %v703_v45 }
  0xd3   : > { %v934_v25 = vpop.permute.xlu1 %933  ;;  %vm1992_vm13 = vmpackc.low %vm747_vm9, %vm746_vm8 }
  0xd4   : > { %vm980_vm5 = vcmp.eq.s32.totalorder %v2628_v39, %v934_v25 }
  0xd5   : > { %vm2056_vm6 = vmpackc.low %vm981_vm4, %vm980_vm5  ;;  %2306 = vset.pattern.permute.xlu1 %v2471_v24 }
  0xd6   : > { %957 = vperm.xlu1 %2306, %v2532_v3   ;;  %2057 = vmatmul.msk.bf16.vlgmr.msrb.gmra.mxu3 %vm2056_vm6, %v2473_v41 }
  0xd7   : > { %v940_v44 = vpop.permute.xlu2 %939  ;;  %2307 = vset.pattern.permute.xlu2 %v2471_v24 }
  0xd8   : > { %960 = vperm.xlu2 %2307, %v2544_v6   ;;  %vm982_vm14 = vcmp.eq.s32.totalorder %v2628_v39, %v940_v44 }
  0xd9   : > { %vm2058_vm15 = vmpackc.low %vm983_vm12, %vm982_vm14  ;;  %v712_v51 = vpop.permute.xlu0 %711 }
  0xdc   : > { %v265_v46 = vpop.permute.xlu1 %264 }
  0xdd   : > { %vm311_vm10 = vcmp.eq.s32.totalorder %v2628_v39, %v265_v46  ;;  %v2212_v46 = vld [vmem:[%s3116_s3 + $0x10] sm:$0xff] }
  0xde   : > { %vm1928_vm11 = vmpackc.low %vm312_vm7, %vm311_vm10  ;;  %2308 = vset.pattern.permute.xlu1 %v2470_v20  ;;  %1517 = vmatpush.bf16.msrb.mxu1 %v2212_v46 }
  0xdf   : > { %1194 = vperm.xlu1 %2308, %v2544_v6   ;;  %1929 = vmatmul.msk.bf16.vlgmr.msra.gmra.mxu1 %vm1928_vm11, %v2473_v41 }
  0xe0   : > { %2309 = vset.pattern.permute.xlu2 %v2472_v28  ;;  %v274_v3 = vpop.permute.xlu2 %273 }
  0xe1   : > { %1993 = vmatmul.msk.bf16.vlgmr.msrb.gmra.mxu2 %vm1992_vm13, %v2473_v41  ;;  %729 = vperm.xlu2 %2309, %v2555_v8   ;;  %vm314_vm6 = vcmp.eq.s32.totalorder %v2628_v39, %v274_v3 }
  0xe2   : > { %v280_v52 = vpop.permute.xlu0 %279 }
  0xe3   : > { %vm316_vm12 = vcmp.eq.s32.totalorder %v2628_v39, %v280_v52 }
  0xe5   : > { %v1171_v47 = vpop.permute.xlu1 %1170 }
  0xe6   : > { %vm1215_vm1 = vcmp.eq.s32.totalorder %v2628_v39, %v1171_v47  ;;  %2059 = vmatmul.msk.bf16.gmra.mxu3 %vm2058_vm15, %v2473_v41  ;;  %vm750_vm15 = vcmp.eq.s32.totalorder %v2628_v39, %v712_v51 }
  0xe7   : > { %vm2120_vm2 = vmpackc.low %vm1215_vm1, %vm1214_vm0  ;;  %2311 = vset.pattern.permute.xlu1 %v2471_v24 }
  0xe8   : > { %963 = vperm.xlu1 %2311, %v2555_v8   ;;  %2121 = vmatmul.msk.bf16.vlgmr.msrb.gmra.mxu0 %vm2120_vm2, %v2473_v41 }
  0xe9   : > { %2312 = vset.pattern.permute.xlu2 %v2471_v24  ;;  %v1177_v6 = vpop.permute.xlu2 %1176 }
  0xea   : > { %966 = vperm.xlu2 %2312, %v2529_v2   ;;  %vm1217_vm9 = vcmp.eq.s32.totalorder %v2628_v39, %v1177_v6 }
  0xeb   : > { %v952_v55 = vpop.permute.xlu0 %951 }
  0xee   : > { %v709_v48 = vpop.permute.xlu1 %708 }
  0xef   : > { %vm749_vm4 = vcmp.eq.s32.totalorder %v2628_v39, %v709_v48  ;;  %v2211_v48 = vld [vmem:[%s3116_s3 + $0x8] sm:$0xff] }
  0xf0   : > { %vm1994_vm5 = vmpackc.low %vm749_vm4, %vm748_vm3  ;;  %2313 = vset.pattern.permute.xlu1 %v2470_v20  ;;  %1518 = vmatpush.bf16.msrb.mxu1 %v2211_v48 }
  0xf1   : > { %1197 = vperm.xlu1 %2313, %v2555_v8   ;;  %1995 = vmatmul.msk.bf16.gmra.mxu2 %vm1994_vm5, %v2473_v41 }
  0xf2   : > { %2314 = vset.pattern.permute.xlu2 %v2470_v20  ;;  %v946_v49 = vpop.permute.xlu2 %945 }
  0xf3   : > { %1200 = vperm.xlu2 %2314, %v2529_v2   ;;  %vm984_vm2 = vcmp.eq.s32.totalorder %v2628_v39, %v946_v49 }
  0xf6   : > { %v2807_v58 = vpop.f32.mrf.mxu0 }
  0xf7   : > { %v271_v50 = vpop.permute.xlu1 %270 }
  0xf8   : > { %vm313_vm7 = vcmp.eq.s32.totalorder %v2628_v39, %v271_v50 }
  0xf9   : > { %vm1930_vm8 = vmpackc.low %vm314_vm6, %vm313_vm7  ;;  %2315 = vset.pattern.permute.xlu1 %v2472_v28 }
  0xfa   : > { %738 = vperm.xlu1 %2315, %v2574_v11   ;;  %1931 = vmatmul.msk.bf16.gmra.mxu1 %vm1930_vm8, %v2473_v41 }
  0xfb   : > { %2316 = vset.pattern.permute.xlu2 %v2471_v24 }
  0xfc   : > { %969 = vperm.xlu2 %2316, %v2541_v5   ;;  %v277_v2 = vpop.permute.xlu2 %276 }
  0xfd   : > { %vm315_vm13 = vcmp.eq.s32.totalorder %v2628_v39, %v277_v2  ;;  %v2210_v2 = vld [vmem:[%s3116_s3] sm:$0xff] }
  0xfe   : > { %vm1932_vm14 = vmpackc.low %vm316_vm12, %vm315_vm13  ;;  %v2815_v61 = vpop.f32.mrf.mxu0  ;;  %1519 = vmatpush.bf16.msrb.mxu1 %v2210_v2 }
 0x100   : > { %v1174_v8 = vpop.permute.xlu1 %1173 }
 0x101   : > { %vm1216_vm10 = vcmp.eq.s32.totalorder %v2628_v39, %v1174_v8 }
 0x102   : > { %vm2122_vm11 = vmpackc.low %vm1217_vm9, %vm1216_vm10  ;;  %2318 = vset.pattern.permute.xlu1 %v2470_v20 }
 0x103   : > { %1203 = vperm.xlu1 %2318, %v2541_v5   ;;  %2123 = vmatmul.msk.bf16.gmra.mxu0 %vm2122_vm11, %v2473_v41 }
 0x104   : > { %2319 = vset.pattern.permute.xlu2 %v2470_v20 }
 0x105   : > { %1206 = vperm.xlu2 %2319, %v2574_v11   ;;  %v1183_v53 = vpop.permute.xlu2 %1182 }
 0x106   : > { %vm1219_vm5 = vcmp.eq.s32.totalorder %v2628_v39, %v1183_v53 }
 0x109   : > { %v715_v54 = vpop.permute.xlu1 %714 }
 0x10a   : > { %vm751_vm0 = vcmp.eq.s32.totalorder %v2628_v39, %v715_v54  ;;  %1933 = vmatmul.msk.bf16.gmra.mxu1 %vm1932_vm14, %v2473_v41  ;;  %vm986_vm14 = vcmp.eq.s32.totalorder %v2628_v39, %v952_v55 }
 0x10b   : > { %vm1996_vm1 = vmpackc.low %vm751_vm0, %vm750_vm15  ;;  %2320 = vset.pattern.permute.xlu1 %v2472_v28 }
 0x10c   : > { %741 = vperm.xlu1 %2320, %v2591_v16   ;;  %1997 = vmatmul.msk.bf16.gmra.mxu2 %vm1996_vm1, %v2473_v41 }
 0x10d   : > { %2321 = vset.pattern.permute.xlu2 %v2472_v28 }
 0x10e   : > { %744 = vperm.xlu2 %2321, %v2595_v17   ;;  %v721_v5 = vpop.permute.xlu2 %720 }
 0x10f   : > { %vm753_vm8 = vcmp.eq.s32.totalorder %v2628_v39, %v721_v5 }
 0x112   : > { %v949_v11 = vpop.permute.xlu1 %948 }
 0x113   : > { %vm985_vm3 = vcmp.eq.s32.totalorder %v2628_v39, %v949_v11  ;;  %v678_v28 = vpop.f32.mrf.mxu3 }
 0x114   : > { %vm2060_vm4 = vmpackc.low %vm985_vm3, %vm984_vm2  ;;  %2322 = vset.pattern.permute.xlu1 %v2471_v24 }
 0x115   : > { %978 = vperm.xlu1 %2322, %v2595_v17   ;;  %2061 = vmatmul.msk.bf16.gmra.mxu3 %vm2060_vm4, %v2473_v41 }
 0x116   : > { %2323 = vset.pattern.permute.xlu2 %v2470_v20 }
 0x117   : > { %1209 = vperm.xlu2 %2323, %v2591_v16   ;;  %v283_v57 = vpop.permute.xlu2 %282  ;;  %v1189_v16 = vpop.permute.xlu0 %1188 }
 0x118   : > { %vm1221_vm11 = vcmp.eq.s32.totalorder %v2628_v39, %v1189_v16  ;;  %vm317_vm1 = vcmp.eq.s32.totalorder %v2628_v39, %v283_v57 }
 0x11b   : > { %v1180_v56 = vpop.permute.xlu1 %1179  ;;  %v680_v17 = vpop.f32.mrf.mxu3 }
 0x11c   : > { %vm1218_vm6 = vcmp.eq.s32.totalorder %v2628_v39, %v1180_v56 }
 0x11d   : > { %vm2124_vm7 = vmpackc.low %vm1219_vm5, %vm1218_vm6 }
 0x11e   : > { %2125 = vmatmul.msk.bf16.gmra.mxu0 %vm2124_vm7, %v2473_v41 }
 0x11f   : > { %v2823_v4 = vpop.f32.mrf.mxu0  ;;  %v1192_v27 = vpop.permute.xlu0 %1191 }
 0x120   : > { %v1186_v60 = vpop.permute.xlu2 %1185 }
 0x121   : > { %vm1220_vm12 = vcmp.eq.s32.totalorder %v2628_v39, %v1186_v60 }
 0x122   : > { %vm2126_vm13 = vmpackc.low %vm1221_vm11, %vm1220_vm12 }
 0x123   : > { %v683_v7 = vpop.f32.mrf.mxu3 }
 0x124   : > { %v581_v24 = vpop.f32.mrf.mxu2  ;;  %v718_v20 = vpop.permute.xlu1 %717 }
 0x125   : > { %v2812_v59 = vadd.f32 %v678_v28, %v581_v24  ;;  %vm752_vm9 = vcmp.eq.s32.totalorder %v2628_v39, %v718_v20 }
 0x126   : > { %vm1998_vm10 = vmpackc.low %vm753_vm8, %vm752_vm9 }
 0x127   : > { %1999 = vmatmul.msk.bf16.gmra.mxu2 %vm1998_vm10, %v2473_v41  ;;  %v2832_v12 = vpop.f32.mrf.mxu0  ;;  %v733_v37 = vpop.permute.xlu0 %732 }
 0x128   : > { %vm757_vm10 = vcmp.eq.s32.totalorder %v2628_v39, %v733_v37 }
 0x129   : > { %v727_v9 = vpop.permute.xlu2 %726 }
 0x12a   : > { %vm755_vm4 = vcmp.eq.s32.totalorder %v2628_v39, %v727_v9 }
 0x12b   : > { %v685_v18 = vpop.f32.mrf.mxu3 }
 0x12c   : > { %v583_v62 = vpop.f32.mrf.mxu2 }
 0x12d   : > { %v2821_v63 = vadd.f32 %v680_v17, %v583_v62  ;;  %v955_v1 = vpop.permute.xlu1 %954 }
 0x12e   : > { %vm987_vm15 = vcmp.eq.s32.totalorder %v2628_v39, %v955_v1  ;;  %2127 = vmatmul.msk.bf16.gmra.mxu0 %vm2126_vm13, %v2473_v41  ;;  %vm1222_vm13 = vcmp.eq.s32.totalorder %v2628_v39, %v1192_v27 }
 0x12f   : > { %vm2062_vm0 = vmpackc.low %vm987_vm15, %vm986_vm14  ;;  %v2845_v31 = vpop.f32.mrf.mxu0  ;;  %v736_v49 = vpop.permute.xlu0 %735 }
 0x130   : > { %2063 = vmatmul.msk.bf16.gmra.mxu3 %vm2062_vm0, %v2473_v41 }
 0x132   : > { %v961_v22 = vpop.permute.xlu2 %960 }
 0x133   : > { %vm989_vm7 = vcmp.eq.s32.totalorder %v2628_v39, %v961_v22 }
 0x134   : > { %v586_v10 = vpop.f32.mrf.mxu2 }
 0x135   : > { %v2828_v15 = vadd.f32 %v683_v7, %v586_v10  ;;  %v2902_v7 = vld [vmem:[%s3115_s2] ss:$0 sm:$0xff] }
 0x136   : > { %v286_v13 = vpop.permute.xlu1 %285  ;;  %v688_v29 = vpop.f32.mrf.mxu3 }
 0x137   : > { %vm318_vm2 = vcmp.eq.s32.totalorder %v2628_v39, %v286_v13  ;;  %v2859_v42 = vpop.f32.mrf.mxu0  ;;  %v973_v11 = vpop.permute.xlu0 %972 }
 0x138   : > { %vm1934_vm3 = vmpackc.low %vm318_vm2, %vm317_vm1 }
 0x139   : > { %1935 = vmatmul.msk.bf16.gmra.mxu1 %vm1934_vm3, %v2473_v41 }
 0x13b   : > { %v730_v35 = vpop.permute.xlu2 %729 }
 0x13c   : > { %v588_v19 = vpop.f32.mrf.mxu2  ;;  %vm756_vm11 = vcmp.eq.s32.totalorder %v2628_v39, %v730_v35 }
 0x13d   : > { %v2835_v21 = vadd.f32 %v685_v18, %v588_v19  ;;  %vm2002_vm12 = vmpackc.low %vm757_vm10, %vm756_vm11 }
 0x13e   : > { %v690_v38 = vpop.f32.mrf.mxu3 }
 0x13f   : > { %v724_v26 = vpop.permute.xlu1 %723  ;;  %v976_v30 = vpop.permute.xlu0 %975 }
 0x140   : > { %vm754_vm5 = vcmp.eq.s32.totalorder %v2628_v39, %v724_v26 }
 0x141   : > { %vm2000_vm6 = vmpackc.low %vm755_vm4, %vm754_vm5 }
 0x142   : > { %2001 = vmatmul.msk.bf16.gmra.mxu2 %vm2000_vm6, %v2473_v41  ;;  %vm993_vm6 = vcmp.eq.s32.totalorder %v2628_v39, %v973_v11 }
 0x144   : > { %v591_v32 = vpop.f32.mrf.mxu2  ;;  %v967_v25 = vpop.permute.xlu2 %966 }
 0x145   : > { %v2848_v33 = vadd.f32 %v688_v29, %v591_v32  ;;  %vm991_vm0 = vcmp.eq.s32.totalorder %v2628_v39, %v967_v25 }
 0x147   : > { %v693_v45 = vpop.f32.mrf.mxu3  ;;  %v1213_v25 = vpop.permute.xlu0 %1212 }
 0x148   : > { %v958_v36 = vpop.permute.xlu1 %957 }
 0x149   : > { %vm988_vm8 = vcmp.eq.s32.totalorder %v2628_v39, %v958_v36 }
 0x14a   : > { %vm2064_vm9 = vmpackc.low %vm989_vm7, %vm988_vm8  ;;  %v2874_v3 = vpop.f32.mrf.mxu0 }
 0x14b   : > { %2065 = vmatmul.msk.bf16.gmra.mxu3 %vm2064_vm9, %v2473_v41  ;;  %vm758_vm9 = vcmp.eq.s32.totalorder %v2628_v39, %v736_v49 }
 0x14c   : > { %v593_v43 = vpop.f32.mrf.mxu2 }
 0x14d   : > { %v2863_v0 = vadd.f32 %v690_v38, %v593_v43  ;;  %v1201_v50 = vpop.permute.xlu2 %1200 }
 0x14e   : > { %vm1225_vm3 = vcmp.eq.s32.totalorder %v2628_v39, %v1201_v50 }
 0x14f   : > { %v695_v8 = vpop.f32.mrf.mxu3 }
 0x151   : > { %v1195_v44 = vpop.permute.xlu1 %1194 }
 0x152   : > { %vm1223_vm14 = vcmp.eq.s32.totalorder %v2628_v39, %v1195_v44  ;;  %2003 = vmatmul.msk.bf16.gmra.mxu2 %vm2002_vm12, %v2473_v41  ;;  %v2890_v54 = vpop.f32.mrf.mxu0 }
 0x153   : > { %vm2128_vm15 = vmpackc.low %vm1223_vm14, %vm1222_vm13 }
 0x154   : > { %v596_v47 = vpop.f32.mrf.mxu2  ;;  %2129 = vmatmul.msk.bf16.gmra.mxu0 %vm2128_vm15, %v2473_v41 }
 0x155   : > { %v2877_v6 = vadd.f32 %v693_v45, %v596_v47 }
 0x156   : > { %v970_v56 = vpop.permute.xlu2 %969 }
 0x157   : > { %vm992_vm7 = vcmp.eq.s32.totalorder %v2628_v39, %v970_v56 }
 0x158   : > { %vm2068_vm8 = vmpackc.low %vm993_vm6, %vm992_vm7 }
 0x159   : > { %v1110_v57 = vpop.f32.mrf.mxu3 }
 0x15a   : > { %v964_v51 = vpop.permute.xlu1 %963 }
 0x15b   : > { %vm990_vm1 = vcmp.eq.s32.totalorder %v2628_v39, %v964_v51 }
 0x15c   : > { %vm2066_vm2 = vmpackc.low %vm991_vm0, %vm990_vm1  ;;  %v598_v52 = vpop.f32.mrf.mxu2  ;;  %v658_v5 = vpop.f32.mrf.mxu1 }
 0x15d   : > { %v2887_v53 = vadd.f32 %v695_v8, %v598_v52  ;;  %2067 = vmatmul.msk.bf16.gmra.mxu3 %vm2066_vm2, %v2473_v41  ;;  %v659_v28 = vadd.f32 %v658_v5, %v2807_v58  ;;  %vm1229_vm2 = vcmp.eq.s32.totalorder %v2628_v39, %v1213_v25 }
 0x15f   : > { %v1207_v62 = vpop.permute.xlu2 %1206 }
 0x160   : > { %vm1227_vm12 = vcmp.eq.s32.totalorder %v2628_v39, %v1207_v62 }
 0x161   : > { %v1112_v18 = vpop.f32.mrf.mxu3 }
 0x163   : > { %v1198_v55 = vpop.permute.xlu1 %1197 }
 0x164   : > { %vm1224_vm4 = vcmp.eq.s32.totalorder %v2628_v39, %v1198_v55  ;;  %v876_v17 = vpop.f32.mrf.mxu2  ;;  %v660_v16 = vpop.f32.mrf.mxu1 }
 0x165   : > { %vm2130_vm5 = vmpackc.low %vm1225_vm3, %vm1224_vm4  ;;  %v916_v24 = vadd.f32 %v876_v17, %v659_v28  ;;  %v1344_v20 = vpop.f32.mrf.mxu0  ;;  %v661_v58 = vadd.f32 %v660_v16, %v2815_v61 }
 0x166   : > { %2131 = vmatmul.msk.bf16.gmra.mxu0 %vm2130_vm5, %v2473_v41  ;;  %vm994_vm5 = vcmp.eq.s32.totalorder %v2628_v39, %v976_v30 }
 0x167   : > { %v1150_v60 = vadd.f32 %v1110_v57, %v916_v24 }
 0x168   : > { %v745_v29 = vpop.permute.xlu2 %744 }
 0x169   : > { %v1384_v1 = vadd.f32 %v1344_v20, %v1150_v60  ;;  %v1115_v38 = vpop.f32.mrf.mxu3  ;;  %vm761_vm15 = vcmp.eq.s32.totalorder %v2628_v39, %v745_v29 }
 0x16b   : > { %v1404_v61 = vadd.f32 %v2902_v7, %v1384_v1 }
 0x16c   : > { %v739_v9 = vpop.permute.xlu1 %738  ;;  %v878_v10 = vpop.f32.mrf.mxu2 }
 0x16d   : > { %vm759_vm10 = vcmp.eq.s32.totalorder %v2628_v39, %v739_v9  ;;  %v917_v13 = vadd.f32 %v878_v10, %v661_v58  ;;  %2069 = vmatmul.msk.bf16.gmra.mxu3 %vm2068_vm8, %v2473_v41  ;;  %v1346_v22 = vpop.f32.mrf.mxu0  ;;  %2327 = vtanh.f32 %v1404_v61 }
 0x16e   : > { %vm2004_vm11 = vmpackc.low %vm759_vm10, %vm758_vm9 }
 0x16f   : > { %v1151_v19 = vadd.f32 %v1112_v18, %v917_v13  ;;  %2005 = vmatmul.msk.bf16.gmra.mxu2 %vm2004_vm11, %v2473_v41 }
 0x171   : > { %v1385_v23 = vadd.f32 %v1346_v22, %v1151_v19  ;;  %v1210_v45 = vpop.permute.xlu2 %1209  ;;  %v1117_v51 = vpop.f32.mrf.mxu3 }
 0x172   : > { %vm1228_vm3 = vcmp.eq.s32.totalorder %v2628_v39, %v1210_v45 }
 0x173   : > { %v1405_v26 = vadd.f32 %v2902_v7, %v1385_v23  ;;  %v2328_v35 = vpop.eup %2327  ;;  %vm2134_vm4 = vmpackc.low %vm1229_vm2, %vm1228_vm3 }
 0x174   : > { %v881_v34 = vpop.f32.mrf.mxu2 }
 0x175   : > { %2329 = vtanh.f32 %v1405_v26  ;;  %v1204_v27 = vpop.permute.xlu1 %1203 }
 0x176   : > { %vm1226_vm13 = vcmp.eq.s32.totalorder %v2628_v39, %v1204_v27 }
 0x177   : > { %vm2132_vm14 = vmpackc.low %vm1227_vm12, %vm1226_vm13  ;;  %v663_v32 = vpop.f32.mrf.mxu1 }
 0x178   : > { %2133 = vmatmul.msk.bf16.gmra.mxu0 %vm2132_vm14, %v2473_v41  ;;  %v664_v36 = vadd.f32 %v663_v32, %v2823_v4 }
 0x17a   : > { %v918_v43 = vadd.f32 %v881_v34, %v664_v36 }
 0x17b   : > { %v2330_v37 = vpop.eup %2329 }
 0x17c   : > { %v1436_v40 = vpack.c.bf16 %v2330_v37, %v2328_v35  ;;  %v883_v4 = vpop.f32.mrf.mxu2  ;;  %v1152_v48 = vadd.f32 %v1115_v38, %v918_v43 }
 0x17e   : > { %v742_v14 = vpop.permute.xlu1 %741  ;;  %1520 = vmatmul.bf16.vlgmr.msrb.gmra.mxu1 %v1436_v40 }
 0x17f   : > { %vm760_vm0 = vcmp.eq.s32.totalorder %v2628_v39, %v742_v14  ;;  %v665_v44 = vpop.f32.mrf.mxu1 }
 0x180   : > { %vm2006_vm1 = vmpackc.low %vm761_vm15, %vm760_vm0  ;;  %v666_v46 = vadd.f32 %v665_v44, %v2832_v12  ;;  %v1349_v47 = vpop.f32.mrf.mxu0 }
 0x181   : > { %2007 = vmatmul.msk.bf16.gmra.mxu2 %vm2006_vm1, %v2473_v41  ;;  %v1386_v50 = vadd.f32 %v1349_v47, %v1152_v48 }
 0x182   : > { %v919_v49 = vadd.f32 %v883_v4, %v666_v46 }
 0x183   : > { %v1406_v52 = vadd.f32 %v2902_v7, %v1386_v50 }
 0x184   : > { %v1153_v8 = vadd.f32 %v1117_v51, %v919_v49 }
 0x185   : > { %2331 = vtanh.f32 %v1406_v52 }
 0x187   : > { %v979_v2 = vpop.permute.xlu1 %978  ;;  %v668_v28 = vpop.f32.mrf.mxu1 }
 0x188   : > { %vm995_vm6 = vcmp.eq.s32.totalorder %v2628_v39, %v979_v2  ;;  %v1351_v12 = vpop.f32.mrf.mxu0  ;;  %2135 = vmatmul.msk.bf16.gmra.mxu0 %vm2134_vm4, %v2473_v41  ;;  %v669_v24 = vadd.f32 %v668_v28, %v2845_v31 }
 0x189   : > { %vm2070_vm7 = vmpackc.low %vm995_vm6, %vm994_vm5  ;;  %v1387_v5 = vadd.f32 %v1351_v12, %v1153_v8 }
 0x18a   : > { %2071 = vmatmul.msk.bf16.gmra.mxu3 %vm2070_vm7, %v2473_v41 }
 0x18b   : > { %v1407_v11 = vadd.f32 %v2902_v7, %v1387_v5  ;;  %v2332_v55 = vpop.eup %2331 }
 0x18d   : > { %2333 = vtanh.f32 %v1407_v11 }
 0x18f   : > { %v886_v56 = vpop.f32.mrf.mxu2  ;;  %v670_v16 = vpop.f32.mrf.mxu1 }
 0x190   : > { %v920_v20 = vadd.f32 %v886_v56, %v669_v24  ;;  %v671_v41 = vadd.f32 %v670_v16, %v2859_v42 }
 0x193   : > { %v2334_v57 = vpop.eup %2333 }
 0x194   : > { %v1437_v17 = vpack.c.bf16 %v2334_v57, %v2332_v55 }
 0x196   : > { %1525 = vmatmul.bf16.gmra.mxu1 %v1437_v17 }
 0x197   : > { %v888_v62 = vpop.f32.mrf.mxu2 }
 0x198   : > { %v1120_v39 = vpop.f32.mrf.mxu3  ;;  %v921_v1 = vadd.f32 %v888_v62, %v671_v41 }
 0x199   : > { %v1154_v60 = vadd.f32 %v1120_v39, %v920_v20 }
 0x19b   : > { %v1354_v58 = vpop.f32.mrf.mxu0 }
 0x19c   : > { %v1388_v9 = vadd.f32 %v1354_v58, %v1154_v60 }
 0x19e   : > { %v1408_v18 = vadd.f32 %v2902_v7, %v1388_v9 }
 0x1a0   : > { %v1122_v10 = vpop.f32.mrf.mxu3  ;;  %2335 = vtanh.f32 %v1408_v18 }
 0x1a1   : > { %v1155_v13 = vadd.f32 %v1122_v10, %v921_v1 }
 0x1a3   : > { %v1356_v19 = vpop.f32.mrf.mxu0 }
 0x1a4   : > { %v1389_v61 = vadd.f32 %v1356_v19, %v1155_v13 }
 0x1a6   : > { %v1409_v22 = vadd.f32 %v2902_v7, %v1389_v61  ;;  %v2336_v31 = vpop.eup %2335 }
 0x1a8   : > { %2337 = vtanh.f32 %v1409_v22 }
 0x1aa   : > { %v891_v27 = vpop.f32.mrf.mxu2 }
 0x1ab   : > { %v1359_v34 = vpop.f32.mrf.mxu0 }
 0x1ae   : > { %v2338_v23 = vpop.eup %2337 }
 0x1af   : > { %v1438_v26 = vpack.c.bf16 %v2338_v23, %v2336_v31 }
 0x1b1   : > { %1530 = vmatmul.bf16.gmra.mxu1 %v1438_v26 }
 0x1b2   : > { %v893_v36 = vpop.f32.mrf.mxu2 }
 0x1b3   : > { %v1125_v30 = vpop.f32.mrf.mxu3  ;;  %v1361_v45 = vpop.f32.mrf.mxu0 }
 0x1b6   : > { %v673_v29 = vpop.f32.mrf.mxu1 }
 0x1b7   : > { %v674_v42 = vadd.f32 %v673_v29, %v2874_v3  ;;  %v2946_v29 = vld [vmem:[%s3117_s4] ss:$0 sm:$0xff] }
 0x1b9   : > { %v922_v32 = vadd.f32 %v891_v27, %v674_v42 }
 0x1bb   : > { %v1156_v35 = vadd.f32 %v1125_v30, %v922_v32  ;;  %v1127_v14 = vpop.f32.mrf.mxu3 }
 0x1bd   : > { %v1390_v40 = vadd.f32 %v1359_v34, %v1156_v35 }
 0x1be   : > { %v675_v37 = vpop.f32.mrf.mxu1 }
 0x1bf   : > { %v676_v38 = vadd.f32 %v675_v37, %v2890_v54  ;;  %v1410_v44 = vadd.f32 %v2902_v7, %v1390_v40 }
 0x1c1   : > { %v923_v43 = vadd.f32 %v893_v36, %v676_v38  ;;  %2339 = vtanh.f32 %v1410_v44 }
 0x1c3   : > { %v1157_v25 = vadd.f32 %v1127_v14, %v923_v43 }
 0x1c5   : > { %v1391_v46 = vadd.f32 %v1361_v45, %v1157_v25  ;;  %v896_v47 = vpop.f32.mrf.mxu2 }
 0x1c6   : > { %v924_v50 = vadd.f32 %v896_v47, %v2812_v59 }
 0x1c7   : > { %v1411_v4 = vadd.f32 %v2902_v7, %v1391_v46  ;;  %v2340_v3 = vpop.eup %2339 }
 0x1c9   : > { %2341 = vtanh.f32 %v1411_v4 }
 0x1cd   : > { %v898_v51 = vpop.f32.mrf.mxu2 }
 0x1ce   : > { %v1130_v48 = vpop.f32.mrf.mxu3  ;;  %v925_v52 = vadd.f32 %v898_v51, %v2821_v63 }
 0x1cf   : > { %v2342_v49 = vpop.eup %2341  ;;  %v1158_v2 = vadd.f32 %v1130_v48, %v924_v50 }
 0x1d0   : > { %v1439_v54 = vpack.c.bf16 %v2342_v49, %v2340_v3 }
 0x1d1   : > { %v1364_v8 = vpop.f32.mrf.mxu0 }
 0x1d2   : > { %1535 = vmatmul.bf16.gmra.mxu1 %v1439_v54  ;;  %v1392_v12 = vadd.f32 %v1364_v8, %v1158_v2 }
 0x1d4   : > { %v1412_v28 = vadd.f32 %v2902_v7, %v1392_v12 }
 0x1d5   : > { %v901_v56 = vpop.f32.mrf.mxu2 }
 0x1d6   : > { %v1132_v5 = vpop.f32.mrf.mxu3  ;;  %2343 = vtanh.f32 %v1412_v28  ;;  %v926_v24 = vadd.f32 %v901_v56, %v2828_v15 }
 0x1d7   : > { %v1159_v11 = vadd.f32 %v1132_v5, %v925_v52 }
 0x1d9   : > { %v1366_v55 = vpop.f32.mrf.mxu0 }
 0x1da   : > { %v1393_v57 = vadd.f32 %v1366_v55, %v1159_v11 }
 0x1dc   : > { %v1413_v17 = vadd.f32 %v2902_v7, %v1393_v57  ;;  %v2344_v39 = vpop.eup %2343 }
 0x1dd   : > { %v903_v63 = vpop.f32.mrf.mxu2 }
 0x1de   : > { %2345 = vtanh.f32 %v1413_v17  ;;  %v927_v62 = vadd.f32 %v903_v63, %v2835_v21 }
 0x1e0   : > { %v1135_v59 = vpop.f32.mrf.mxu3 }
 0x1e1   : > { %v1160_v20 = vadd.f32 %v1135_v59, %v926_v24 }
 0x1e3   : > { %v1369_v16 = vpop.f32.mrf.mxu0 }
 0x1e4   : > { %v2346_v60 = vpop.eup %2345  ;;  %v1394_v41 = vadd.f32 %v1369_v16, %v1160_v20 }
 0x1e5   : > { %v1440_v58 = vpack.c.bf16 %v2346_v60, %v2344_v39 }
 0x1e6   : > { %v1414_v10 = vadd.f32 %v2902_v7, %v1394_v41 }
 0x1e7   : > { %1540 = vmatmul.bf16.gmra.mxu1 %v1440_v58 }
 0x1e8   : > { %v1137_v1 = vpop.f32.mrf.mxu3  ;;  %2347 = vtanh.f32 %v1414_v10 }
 0x1e9   : > { %v1161_v9 = vadd.f32 %v1137_v1, %v927_v62 }
 0x1eb   : > { %v1371_v13 = vpop.f32.mrf.mxu0 }
 0x1ec   : > { %v1395_v18 = vadd.f32 %v1371_v13, %v1161_v9 }
 0x1ee   : > { %v1415_v19 = vadd.f32 %v2902_v7, %v1395_v18  ;;  %v2348_v31 = vpop.eup %2347 }
 0x1f0   : > { %2349 = vtanh.f32 %v1415_v19  ;;  %v1140_v15 = vpop.f32.mrf.mxu3 }
 0x1f2   : > { %v906_v61 = vpop.f32.mrf.mxu2 }
 0x1f3   : > { %v928_v22 = vadd.f32 %v906_v61, %v2848_v33 }
 0x1f5   : > { %v1374_v23 = vpop.f32.mrf.mxu0  ;;  %v1162_v21 = vadd.f32 %v1140_v15, %v928_v22 }
 0x1f6   : > { %v2350_v26 = vpop.eup %2349 }
 0x1f7   : > { %v1441_v27 = vpack.c.bf16 %v2350_v26, %v2348_v31  ;;  %v1396_v42 = vadd.f32 %v1374_v23, %v1162_v21 }
 0x1f8   : > { %v1142_v35 = vpop.f32.mrf.mxu3 }
 0x1f9   : > { %1545 = vmatmul.bf16.gmra.mxu1 %v1441_v27  ;;  %v1416_v38 = vadd.f32 %v2902_v7, %v1396_v42 }
 0x1fa   : > { %v908_v30 = vpop.f32.mrf.mxu2 }
 0x1fb   : > { %v929_v32 = vadd.f32 %v908_v30, %v2863_v0  ;;  %v1521_v34 = vpop.f32.mrf.mxu1  ;;  %2351 = vtanh.f32 %v1416_v38 }
 0x1fc   : > { %v2950_v36 = vadd.f32 %v2946_v29, %v1521_v34 }
 0x1fd   : > { %v1163_v33 = vadd.f32 %v1142_v35, %v929_v32  ;;  %v1376_v37 = vpop.f32.mrf.mxu0 }
 0x1fe   : > { %1561 = vmax.xlane.f32.xlu1 %v2950_v36 }
 0x1ff   : > { %v1397_v40 = vadd.f32 %v1376_v37, %v1163_v33 }
 0x201   : > { %v1417_v43 = vadd.f32 %v2902_v7, %v1397_v40  ;;  %v2352_v44 = vpop.eup %2351 }
 0x203   : > { %2353 = vtanh.f32 %v1417_v43  ;;  %v1523_v14 = vpop.f32.mrf.mxu1 }
 0x204   : > { %v2956_v25 = vadd.f32 %v2946_v29, %v1523_v14  ;;  %v911_v0 = vpop.f32.mrf.mxu2 }
 0x205   : > { %v930_v47 = vadd.f32 %v911_v0, %v2877_v6  ;;  %v1379_v4 = vpop.f32.mrf.mxu0 }
 0x206   : > { %1563 = vmax.xlane.f32.xlu2 %v2956_v25 }
 0x209   : > { %v2354_v45 = vpop.eup %2353 }
 0x20a   : > { %v1442_v46 = vpack.c.bf16 %v2354_v45, %v2352_v44 }
 0x20c   : > { %1550 = vmatmul.bf16.gmra.mxu1 %v1442_v46  ;;  %v913_v49 = vpop.f32.mrf.mxu2 }
 0x20d   : > { %v1145_v3 = vpop.f32.mrf.mxu3  ;;  %v931_v54 = vadd.f32 %v913_v49, %v2887_v53  ;;  %v1381_v5 = vpop.f32.mrf.mxu0 }
 0x20e   : > { %v1164_v48 = vadd.f32 %v1145_v3, %v930_v47 }
 0x210   : > { %v1398_v50 = vadd.f32 %v1379_v4, %v1164_v48 }
 0x212   : > { %v1418_v12 = vadd.f32 %v2902_v7, %v1398_v50 }
 0x213   : > { %v1526_v51 = vpop.f32.mrf.mxu1 }
 0x214   : > { %v2962_v2 = vadd.f32 %v2946_v29, %v1526_v51  ;;  %2355 = vtanh.f32 %v1418_v12 }
 0x215   : > { %v1147_v8 = vpop.f32.mrf.mxu3 }
 0x216   : > { %v1165_v52 = vadd.f32 %v1147_v8, %v931_v54  ;;  %1565 = vmax.xlane.f32.xlu0 %v2962_v2 }
 0x218   : > { %v1399_v11 = vadd.f32 %v1381_v5, %v1165_v52 }
 0x21a   : > { %v1419_v6 = vadd.f32 %v2902_v7, %v1399_v11  ;;  %v2356_v53 = vpop.eup %2355 }
 0x21b   : > { %v1528_v28 = vpop.f32.mrf.mxu1 }
 0x21c   : > { %2357 = vtanh.f32 %v1419_v6  ;;  %v1529_v55 = vadd.f32 %v2946_v29, %v1528_v28 }
 0x21e   : > { %1567 = vmax.xlane.f32.xlu2 %v1529_v55 }
 0x222   : > { %v2358_v56 = vpop.eup %2357 }
 0x223   : > { %v1443_v57 = vpack.c.bf16 %v2358_v56, %v2356_v53 }
 0x225   : > { %1555 = vmatmul.bf16.gmra.mxu1 %v1443_v57 }
 0x22e   : > { %v1531_v17 = vpop.f32.mrf.mxu1 }
 0x22f   : > { %v1532_v59 = vadd.f32 %v2946_v29, %v1531_v17 }
 0x231   : > { %1569 = vmax.xlane.f32.xlu1 %v1532_v59 }
 0x236   : > { %v1533_v24 = vpop.f32.mrf.mxu1 }
 0x237   : > { %v1534_v39 = vadd.f32 %v2946_v29, %v1533_v24 }
 0x239   : > { %1571 = vmax.xlane.f32.xlu2 %v1534_v39 }
 0x24f   : > { %v1536_v20 = vpop.f32.mrf.mxu1 }
 0x250   : > { %v2971_v7 = vadd.f32 %v2946_v29, %v1536_v20 }
 0x252   : > { %1573 = vmax.xlane.f32.xlu1 %v2971_v7 }
 0x257   : > { %v1538_v16 = vpop.f32.mrf.mxu1 }
 0x258   : > { %v2975_v60 = vadd.f32 %v2946_v29, %v1538_v16 }
 0x25a   : > { %1575 = vmax.xlane.f32.xlu2 %v2975_v60 }
 0x264   : > { %v1541_v63 = vpop.f32.mrf.mxu1 }
 0x265   : > { %v2979_v58 = vadd.f32 %v2946_v29, %v1541_v63 }
 0x267   : > { %1577 = vmax.xlane.f32.xlu0 %v2979_v58 }
 0x26c   : > { %v1543_v62 = vpop.f32.mrf.mxu1 }
 0x26d   : > { %v2983_v41 = vadd.f32 %v2946_v29, %v1543_v62 }
 0x26f   : > { %1579 = vmax.xlane.f32.xlu1 %v2983_v41 }
 0x271   : > { %v1562_v19 = vpop.xlane.xlu1 %1561 }
 0x272   : > { %v2999_v22 = vsub.f32 %v2950_v36, %v1562_v19 }
 0x274   : > { %v1609_v31 = vmul.f32 1.442695, %v2999_v22 }
 0x276   : > { %v1546_v1 = vpop.f32.mrf.mxu1  ;;  %2359 = vpow2.f32 %v1609_v31 }
 0x277   : > { %v2987_v9 = vadd.f32 %v2946_v29, %v1546_v1 }
 0x279   : > { %1581 = vmax.xlane.f32.xlu2 %v2987_v9  ;;  %v1564_v15 = vpop.xlane.xlu2 %1563 }
 0x27a   : > { %v3010_v32 = vsub.f32 %v2956_v25, %v1564_v15 }
 0x27c   : > { %v2360_v30 = vpop.eup %2359  ;;  %v1611_v34 = vmul.f32 1.442695, %v3010_v32 }
 0x27e   : > { %v1548_v10 = vpop.f32.mrf.mxu1 }
 0x27f   : > { %v2991_v13 = vadd.f32 %v2946_v29, %v1548_v10 }
 0x281   : > { %1583 = vmax.xlane.f32.xlu0 %v2991_v13 }
 0x289   : > { %v1551_v18 = vpop.f32.mrf.mxu1  ;;  %v1566_v35 = vpop.xlane.xlu0 %1565 }
 0x28a   : > { %v2995_v61 = vadd.f32 %v2946_v29, %v1551_v18  ;;  %v3017_v40 = vsub.f32 %v2962_v2, %v1566_v35 }
 0x28c   : > { %1585 = vmax.xlane.f32.xlu1 %v2995_v61  ;;  %v1613_v14 = vmul.f32 1.442695, %v3017_v40 }
 0x291   : > { %v1553_v23 = vpop.f32.mrf.mxu1  ;;  %v1568_v21 = vpop.xlane.xlu2 %1567 }
 0x292   : > { %v3003_v26 = vadd.f32 %v2946_v29, %v1553_v23  ;;  %v3006_v27 = vsub.f32 %v1529_v55, %v1568_v21 }
 0x294   : > { %1587 = vmax.xlane.f32.xlu2 %v3003_v26  ;;  %v1615_v42 = vmul.f32 1.442695, %v3006_v27 }
 0x296   : > { %2361 = vpow2.f32 %v1615_v42 }
 0x297   : > { %2363 = vpow2.f32 %v1611_v34 }
 0x298   : > { %2365 = vpow2.f32 %v1613_v14 }
 0x29c   : > { %1641 = vadd.xlane.f32.xlu2 %v2360_v30  ;;  %v2362_v33 = vpop.eup %2361 }
 0x29d   : > { %v2364_v45 = vpop.eup %2363 }
 0x29e   : > { %v2366_v3 = vpop.eup %2365 }
 0x2a2   : > { %v1556_v36 = vpop.f32.mrf.mxu1 }
 0x2a3   : > { %v3014_v37 = vadd.f32 %v2946_v29, %v1556_v36 }
 0x2a4   : > { %v1570_v38 = vpop.xlane.xlu1 %1569  ;;  %1647 = vadd.xlane.f32.xlu2 %v2362_v33 }
 0x2a5   : > { %1589 = vmax.xlane.f32.xlu0 %v3014_v37  ;;  %v3020_v43 = vsub.f32 %v1532_v59, %v1570_v38 }
 0x2a7   : > { %v1617_v25 = vmul.f32 1.442695, %v3020_v43 }
 0x2a9   : > { %2367 = vpow2.f32 %v1617_v25 }
 0x2aa   : > { %v1558_v0 = vpop.f32.mrf.mxu1 }
 0x2ab   : > { %v3025_v44 = vadd.f32 %v2946_v29, %v1558_v0 }
 0x2ac   : > { %v1572_v46 = vpop.xlane.xlu2 %1571 }
 0x2ad   : > { %1591 = vmax.xlane.f32.xlu1 %v3025_v44  ;;  %1643 = vadd.xlane.f32.xlu0 %v2364_v45  ;;  %v3028_v47 = vsub.f32 %v1534_v39, %v1572_v46 }
 0x2af   : > { %v1619_v4 = vmul.f32 1.442695, %v3028_v47  ;;  %v2368_v48 = vpop.eup %2367 }
 0x2b1   : > { %2369 = vpow2.f32 %v1619_v4 }
 0x2b5   : > { %1645 = vadd.xlane.f32.xlu1 %v2366_v3  ;;  %1649 = vadd.xlane.f32.xlu0 %v2368_v48 }
 0x2b7   : > { %v2370_v49 = vpop.eup %2369 }
 0x2bd   : > { %1651 = vadd.xlane.f32.xlu1 %v2370_v49 }
 0x2c5   : > { %v1574_v29 = vpop.xlane.xlu1 %1573 }
 0x2c6   : > { %v3032_v50 = vsub.f32 %v2971_v7, %v1574_v29 }
 0x2c8   : > { %v1621_v51 = vmul.f32 1.442695, %v3032_v50 }
 0x2ca   : > { %2371 = vpow2.f32 %v1621_v51 }
 0x2cd   : > { %v1576_v54 = vpop.xlane.xlu2 %1575 }
 0x2ce   : > { %v3036_v2 = vsub.f32 %v2975_v60, %v1576_v54 }
 0x2d0   : > { %v2372_v8 = vpop.eup %2371  ;;  %v1623_v52 = vmul.f32 1.442695, %v3036_v2 }
 0x2d1   : > { %1653 = vadd.xlane.f32.xlu2 %v2372_v8 }
 0x2d2   : > { %2373 = vpow2.f32 %v1623_v52 }
 0x2d8   : > { %v2374_v12 = vpop.eup %2373 }
 0x2d9   : > { %1655 = vadd.xlane.f32.xlu0 %v2374_v12 }
 0x2da   : > { %v1578_v5 = vpop.xlane.xlu0 %1577 }
 0x2db   : > { %v3040_v11 = vsub.f32 %v2979_v58, %v1578_v5 }
 0x2dd   : > { %v1625_v6 = vmul.f32 1.442695, %v3040_v11 }
 0x2df   : > { %2375 = vpow2.f32 %v1625_v6 }
 0x2e2   : > { %v1580_v28 = vpop.xlane.xlu1 %1579 }
 0x2e3   : > { %v3044_v55 = vsub.f32 %v2983_v41, %v1580_v28 }
 0x2e5   : > { %v2376_v53 = vpop.eup %2375  ;;  %v1627_v56 = vmul.f32 1.442695, %v3044_v55 }
 0x2e6   : > { %1657 = vadd.xlane.f32.xlu1 %v2376_v53 }
 0x2e7   : > { %2377 = vpow2.f32 %v1627_v56 }
 0x2ec   : > { %v1582_v57 = vpop.xlane.xlu2 %1581 }
 0x2ed   : > { %v2378_v17 = vpop.eup %2377  ;;  %v3048_v59 = vsub.f32 %v2987_v9, %v1582_v57 }
 0x2ee   : > { %1659 = vadd.xlane.f32.xlu2 %v2378_v17 }
 0x2ef   : > { %v1629_v24 = vmul.f32 1.442695, %v3048_v59 }
 0x2f1   : > { %2379 = vpow2.f32 %v1629_v24 }
 0x2f4   : > { %v1584_v39 = vpop.xlane.xlu0 %1583 }
 0x2f5   : > { %v3052_v20 = vsub.f32 %v2991_v13, %v1584_v39 }
 0x2f7   : > { %v2380_v7 = vpop.eup %2379  ;;  %v1631_v16 = vmul.f32 1.442695, %v3052_v20 }
 0x2f8   : > { %1661 = vadd.xlane.f32.xlu0 %v2380_v7 }
 0x2f9   : > { %2381 = vpow2.f32 %v1631_v16 }
 0x2ff   : > { %v2382_v60 = vpop.eup %2381  ;;  %v1586_v63 = vpop.xlane.xlu1 %1585 }
 0x300   : > { %v3056_v58 = vsub.f32 %v2995_v61, %v1586_v63  ;;  %1663 = vadd.xlane.f32.xlu1 %v2382_v60 }
 0x302   : > { %v1633_v62 = vmul.f32 1.442695, %v3056_v58 }
 0x304   : > { %2383 = vpow2.f32 %v1633_v62 }
 0x307   : > { %v1588_v41 = vpop.xlane.xlu2 %1587 }
 0x308   : > { %v3060_v1 = vsub.f32 %v3003_v26, %v1588_v41 }
 0x30a   : > { %v2384_v9 = vpop.eup %2383  ;;  %v1635_v10 = vmul.f32 1.442695, %v3060_v1 }
 0x30b   : > { %1665 = vadd.xlane.f32.xlu2 %v2384_v9 }
 0x30c   : > { %2385 = vpow2.f32 %v1635_v10 }
 0x30f   : > { %v1642_v13 = vpop.xlane.xlu2 %1641 }
 0x310   : > { %2387 = vlog2.f32 %v1642_v13 }
 0x312   : > { %v2386_v18 = vpop.eup %2385 }
 0x313   : > { %1667 = vadd.xlane.f32.xlu0 %v2386_v18 }
 0x316   : > { %v2388_v19 = vpop.eup %2387 }
 0x317   : > { %v1674_v15 = vmul.f32 0.6931472, %v2388_v19  ;;  %v1648_v61 = vpop.xlane.xlu2 %1647 }
 0x318   : > { %2389 = vlog2.f32 %v1648_v61  ;;  %v1590_v31 = vpop.xlane.xlu0 %1589 }
 0x319   : > { %v1705_v23 = vsub.f32 %v2999_v22, %v1674_v15  ;;  %v3072_v26 = vsub.f32 %v3014_v37, %v1590_v31 }
 0x31b   : > { %1721 = vst [vmem:[%s3068_s7] sm:$0xff] %v1705_v23  ;;  %v1637_v21 = vmul.f32 1.442695, %v3072_v26 }
 0x31d   : > { %2391 = vpow2.f32 %v1637_v21 }
 0x31e   : > { %v2390_v42 = vpop.eup %2389 }
 0x31f   : > { %v1680_v30 = vmul.f32 0.6931472, %v2390_v42 }
 0x320   : > { %v1592_v34 = vpop.xlane.xlu1 %1591  ;;  %v1644_v35 = vpop.xlane.xlu0 %1643 }
 0x321   : > { %v1708_v36 = vsub.f32 %v3006_v27, %v1680_v30  ;;  %v3078_v33 = vsub.f32 %v3025_v44, %v1592_v34  ;;  %2393 = vlog2.f32 %v1644_v35 }
 0x323   : > { %v2392_v38 = vpop.eup %2391  ;;  %1724 = vst [vmem:[%s3068_s7 + $0x18] sm:$0xff] %v1708_v36  ;;  %v1639_v22 = vmul.f32 1.442695, %v3078_v33 }
 0x324   : > { %1669 = vadd.xlane.f32.xlu1 %v2392_v38 }
 0x325   : > { %2395 = vpow2.f32 %v1639_v22 }
 0x327   : > { %v2394_v37 = vpop.eup %2393 }
 0x328   : > { %v1676_v14 = vmul.f32 0.6931472, %v2394_v37  ;;  %v1646_v25 = vpop.xlane.xlu1 %1645  ;;  %v1650_v0 = vpop.xlane.xlu0 %1649 }
 0x329   : > { %2397 = vlog2.f32 %v1646_v25 }
 0x32a   : > { %v1706_v27 = vsub.f32 %v3010_v32, %v1676_v14  ;;  %2399 = vlog2.f32 %v1650_v0 }
 0x32b   : > { %v2396_v45 = vpop.eup %2395 }
 0x32c   : > { %1722 = vst [vmem:[%s3068_s7 + $0x8] sm:$0xff] %v1706_v27  ;;  %1671 = vadd.xlane.f32.xlu2 %v2396_v45 }
 0x32f   : > { %v2398_v44 = vpop.eup %2397 }
 0x330   : > { %v2400_v46 = vpop.eup %2399  ;;  %v1678_v4 = vmul.f32 0.6931472, %v2398_v44  ;;  %v1652_v3 = vpop.xlane.xlu1 %1651 }
 0x331   : > { %v1682_v48 = vmul.f32 0.6931472, %v2400_v46  ;;  %2401 = vlog2.f32 %v1652_v3 }
 0x332   : > { %v1707_v49 = vsub.f32 %v3017_v40, %v1678_v4 }
 0x333   : > { %v1709_v29 = vsub.f32 %v3020_v43, %v1682_v48 }
 0x334   : > { %1723 = vst [vmem:[%s3068_s7 + $0x10] sm:$0xff] %v1707_v49 }
 0x335   : > { %1725 = vst [vmem:[%s3068_s7 + $0x20] sm:$0xff] %v1709_v29 }
 0x337   : > { %v2402_v32 = vpop.eup %2401 }
 0x338   : > { %v1684_v51 = vmul.f32 0.6931472, %v2402_v32 }
 0x33a   : > { %v1710_v54 = vsub.f32 %v3028_v47, %v1684_v51 }
 0x33c   : > { %1726 = vst [vmem:[%s3068_s7 + $0x28] sm:$0xff] %v1710_v54 }
 0x344   : > { %v1654_v8 = vpop.xlane.xlu2 %1653 }
 0x345   : > { %2403 = vlog2.f32 %v1654_v8 }
 0x34b   : > { %v2404_v52 = vpop.eup %2403 }
 0x34c   : > { %v1686_v12 = vmul.f32 0.6931472, %v2404_v52  ;;  %v1656_v5 = vpop.xlane.xlu0 %1655 }
 0x34d   : > { %2405 = vlog2.f32 %v1656_v5 }
 0x34e   : > { %v1711_v6 = vsub.f32 %v3032_v50, %v1686_v12 }
 0x350   : > { %1727 = vst [vmem:[%s3068_s7 + $0x30] sm:$0xff] %v1711_v6 }
 0x353   : > { %v2406_v40 = vpop.eup %2405 }
 0x354   : > { %v1688_v43 = vmul.f32 0.6931472, %v2406_v40 }
 0x356   : > { %v1712_v28 = vsub.f32 %v3036_v2, %v1688_v43 }
 0x358   : > { %1728 = vst [vmem:[%s3068_s7 + $0x38] sm:$0xff] %v1712_v28 }
 0x359   : > { %v1658_v53 = vpop.xlane.xlu1 %1657 }
 0x35a   : > { %2407 = vlog2.f32 %v1658_v53 }
 0x360   : > { %v2408_v47 = vpop.eup %2407 }
 0x361   : > { %v1690_v56 = vmul.f32 0.6931472, %v2408_v47  ;;  %v1660_v57 = vpop.xlane.xlu2 %1659 }
 0x362   : > { %2409 = vlog2.f32 %v1660_v57 }
 0x363   : > { %v1713_v17 = vsub.f32 %v3040_v11, %v1690_v56 }
 0x365   : > { %1729 = vst [vmem:[%s3068_s7 + $0x40] sm:$0xff] %v1713_v17 }
 0x368   : > { %v2410_v24 = vpop.eup %2409 }
 0x369   : > { %v1692_v50 = vmul.f32 0.6931472, %v2410_v24 }
 0x36b   : > { %v1714_v39 = vsub.f32 %v3044_v55, %v1692_v50  ;;  %v1662_v7 = vpop.xlane.xlu0 %1661 }
 0x36c   : > { %2411 = vlog2.f32 %v1662_v7 }
 0x36d   : > { %1730 = vst [vmem:[%s3068_s7 + $0x48] sm:$0xff] %v1714_v39 }
 0x372   : > { %v2412_v2 = vpop.eup %2411 }
 0x373   : > { %v1694_v16 = vmul.f32 0.6931472, %v2412_v2  ;;  %v1664_v60 = vpop.xlane.xlu1 %1663 }
 0x374   : > { %2413 = vlog2.f32 %v1664_v60 }
 0x375   : > { %v1715_v63 = vsub.f32 %v3048_v59, %v1694_v16 }
 0x377   : > { %1731 = vst [vmem:[%s3068_s7 + $0x50] sm:$0xff] %v1715_v63 }
 0x37a   : > { %v2414_v62 = vpop.eup %2413 }
 0x37b   : > { %v1696_v11 = vmul.f32 0.6931472, %v2414_v62 }
 0x37d   : > { %v1716_v41 = vsub.f32 %v3052_v20, %v1696_v11 }
 0x37e   : > { %v1666_v9 = vpop.xlane.xlu2 %1665 }
 0x37f   : > { %1732 = vst [vmem:[%s3068_s7 + $0x58] sm:$0xff] %v1716_v41  ;;  %2415 = vlog2.f32 %v1666_v9 }
 0x385   : > { %v2416_v55 = vpop.eup %2415 }
 0x386   : > { %v1698_v10 = vmul.f32 0.6931472, %v2416_v55  ;;  %v1668_v13 = vpop.xlane.xlu0 %1667 }
 0x387   : > { %2417 = vlog2.f32 %v1668_v13 }
 0x388   : > { %v1717_v18 = vsub.f32 %v3056_v58, %v1698_v10 }
 0x38a   : > { %1733 = vst [vmem:[%s3068_s7 + $0x60] sm:$0xff] %v1717_v18 }
 0x38d   : > { %v2418_v19 = vpop.eup %2417 }
 0x38e   : > { %v1700_v59 = vmul.f32 0.6931472, %v2418_v19 }
 0x390   : > { %v1718_v15 = vsub.f32 %v3060_v1, %v1700_v59 }
 0x392   : > { %1734 = vst [vmem:[%s3068_s7 + $0x68] sm:$0xff] %v1718_v15 }
 0x397   : > { %v1670_v61 = vpop.xlane.xlu1 %1669 }
 0x398   : > { %2419 = vlog2.f32 %v1670_v61 }
 0x39e   : > { %v2420_v20 = vpop.eup %2419 }
 0x39f   : > { %v1702_v31 = vmul.f32 0.6931472, %v2420_v20  ;;  %v1672_v23 = vpop.xlane.xlu2 %1671 }
 0x3a0   : > { %2421 = vlog2.f32 %v1672_v23 }
 0x3a1   : > { %v1719_v21 = vsub.f32 %v3072_v26, %v1702_v31 }
 0x3a3   : > { %1735 = vst [vmem:[%s3068_s7 + $0x70] sm:$0xff] %v1719_v21 }
 0x3a6   : > { %v2422_v42 = vpop.eup %2421 }
 0x3a7   : > { %v1704_v30 = vmul.f32 0.6931472, %v2422_v42 }
 0x3a9   : > { %v1720_v58 = vsub.f32 %v3078_v33, %v1704_v30 }
 0x3ab   : > { %1736 = vst [vmem:[%s3068_s7 + $0x78] sm:$0xff] %v1720_v58 }
 0x3ac PF: > { %s16_s18 = sadd.s32 1, %s2463_s18  }
 0x3ad   : > { %p13_p7 = scmp.ge.s32.totalorder %s16_s18, 4  }
 0x3af   :  { %15 = sbr.rel (!%p13_p7) target bundleno = 1 (0x1), region = 79 }
 0x3b4   :  { %1759 = vsyncpa [#allocation3], 1 }
 0x3b5   :  { %1761 = vsyncpa [#allocation3 + $0x1], 1 }

</bundles_post_ra>
